<compile_context>
chip_gen: v6e
topology: v6e:2x2x1
jax: 0.10.0
libtpu: 0.0.40
codegen_flags: <defaults>
</compile_context>

<pallas_src>
import jax
import jax.numpy as jnp
from jax.experimental import pallas as pl
from jax.experimental.pallas import tpu as pltpu

# ---- module hyper-parameters (small demo sizes; PyTorch default W is 256) ---
D = 8
W = 64                 # hidden width (use 256 for the real model: matches MXU tiles)
INPUT_CH = 3
INPUT_CH_VIEWS = 3
OUTPUT_CH = 4
SKIPS = (4,)
RAY_BENDING_LATENT = 0
IN_TOTAL = INPUT_CH + INPUT_CH_VIEWS + RAY_BENDING_LATENT


def nerf_mlp_kernel(x_ref,
                    w0, b0, w1, b1, w2, b2, w3, b3, w4, b4,
                    w5p, w5h, b5, w6, b6, w7, b7,
                    wout, bout,
                    out_ref):
    f32 = jnp.float32
    bf16 = jnp.bfloat16
    pts = x_ref[:INPUT_CH, :].astype(f32)            # (INPUT_CH, tile_n)

    def vpu_k3(w_ref, x):
        # K=3 contraction as rank-1 VPU multiply-adds (keeps the MXU free and
        # avoids a 3-row systolic push).  w_ref: (W, INPUT_CH) f32.
        w = w_ref[...]
        acc = w[:, 0:1] * x[0:1, :]
        for k in range(1, INPUT_CH):
            acc = acc + w[:, k:k + 1] * x[k:k + 1, :]
        return acc                                   # (W, tile_n) f32

    def mxu(w_ref, h):
        # bf16 operands, f32 accumulation on the MXU.  w_ref: (out, in) bf16.
        return jnp.dot(w_ref[...], h.astype(bf16), preferred_element_type=f32)

    h = jnp.maximum(vpu_k3(w0, pts) + b0[...], 0.0)          # layer 0 (3 -> W)
    h = jnp.maximum(mxu(w1, h) + b1[...], 0.0)               # layer 1
    h = jnp.maximum(mxu(w2, h) + b2[...], 0.0)               # layer 2
    h = jnp.maximum(mxu(w3, h) + b3[...], 0.0)               # layer 3
    h = jnp.maximum(mxu(w4, h) + b4[...], 0.0)               # layer 4 (skip after)
    # layer 5 consumes cat([input_pts, h], -1); the weight split avoids the concat.
    h = jnp.maximum(vpu_k3(w5p, pts) + mxu(w5h, h) + b5[...], 0.0)
    h = jnp.maximum(mxu(w6, h) + b6[...], 0.0)               # layer 6
    h = jnp.maximum(mxu(w7, h) + b7[...], 0.0)               # layer 7
    out = mxu(wout, h) + bout[...]                           # output_linear
    out_ref[...] = out.astype(out_ref.dtype)                 # (OUTPUT_CH, tile_n)


def nerf_forward(x, params, *, tile_n=2048):
    """x: (N, IN_TOTAL) f32.  Returns (N, OUTPUT_CH) f32.

    tile_n must be a multiple of 128; N is padded to a tile multiple internally.
    tile_n=2048 keeps the per-step VMEM footprint well under the 32 MiB scoped
    budget on every generation (v7x included) while amortizing the ~0.35 us
    per-grid-step overhead.
    """
    N, C = x.shape
    assert C == IN_TOTAL
    assert tile_n % 128 == 0
    n_pad = pl.cdiv(N, tile_n) * tile_n

    # Feature-major (C, N) layout -> lane-dense input loads and output stores.
    xt = jnp.transpose(x)                            # (IN_TOTAL, N)
    if n_pad != N:
        xt = jnp.pad(xt, ((0, 0), (0, n_pad - N)))

    in_specs = [pl.BlockSpec((IN_TOTAL, tile_n), lambda i: (0, i))]
    for p in params:                                 # grid-invariant weights/biases
        in_specs.append(pl.BlockSpec(p.shape, lambda i: (0, 0)))

    flops_per_row = 2 * (INPUT_CH * W + 4 * W * W + (W + INPUT_CH) * W
                         + 2 * W * W + W * OUTPUT_CH)
    bytes_accessed = (n_pad * IN_TOTAL * 4 + n_pad * OUTPUT_CH * 4
                      + sum(int(p.size) * p.dtype.itemsize for p in params))

    out_t = pl.pallas_call(
        nerf_mlp_kernel,
        out_shape=jax.ShapeDtypeStruct((OUTPUT_CH, n_pad), x.dtype),
        grid_spec=pltpu.PrefetchScalarGridSpec(
            num_scalar_prefetch=0,
            grid=(n_pad // tile_n,),
            in_specs=in_specs,
            out_specs=pl.BlockSpec((OUTPUT_CH, tile_n), lambda i: (0, i)),
        ),
        compiler_params=pltpu.CompilerParams(
            dimension_semantics=("parallel",),
            vmem_limit_bytes=32 * 1024 * 1024),
        cost_estimate=pl.CostEstimate(
            flops=int(n_pad * flops_per_row),
            transcendentals=0,
            bytes_accessed=int(bytes_accessed)),
    )(xt, *params)

    return jnp.transpose(out_t)[:N]                  # (N, OUTPUT_CH)


def init_params(key):
    """Deterministic synthetic weights, same shapes as the nn.Module.

    Weights are in PyTorch (out_features, in_features) orientation; biases are
    (out_features, 1).  MXU-bound weights are bf16, the K=3 (VPU) ones stay f32.
    """
    f32, bf16 = jnp.float32, jnp.bfloat16
    ks = iter(jax.random.split(key, D + 1))

    def linear(fan_in, fan_out):
        kw, kb = jax.random.split(next(ks))
        w = jax.random.normal(kw, (fan_out, fan_in), f32) / jnp.sqrt(jnp.float32(fan_in))
        b = 0.01 * jax.random.normal(kb, (fan_out, 1), f32)
        return w, b

    w0, b0 = linear(INPUT_CH, W)                     # pts_linears[0]
    w1, b1 = linear(W, W)
    w2, b2 = linear(W, W)
    w3, b3 = linear(W, W)
    w4, b4 = linear(W, W)
    w5, b5 = linear(W + INPUT_CH, W)                 # pts_linears[5] (skip layer)
    w5p = w5[:, :INPUT_CH]                           # cat order is [input_pts, h]
    w5h = w5[:, INPUT_CH:].astype(bf16)
    w6, b6 = linear(W, W)
    w7, b7 = linear(W, W)
    wout, bout = linear(W, OUTPUT_CH)                # output_linear
    return (w0, b0,
            w1.astype(bf16), b1, w2.astype(bf16), b2,
            w3.astype(bf16), b3, w4.astype(bf16), b4,
            w5p, w5h, b5,
            w6.astype(bf16), b6, w7.astype(bf16), b7,
            wout.astype(bf16), bout)


def nerf_forward_ref(x, params):
    """Pure-JAX reference mirroring the kernel math (bf16 dot inputs, f32 acc)."""
    (w0, b0, w1, b1, w2, b2, w3, b3, w4, b4,
     w5p, w5h, b5, w6, b6, w7, b7, wout, bout) = params
    f32, bf16 = jnp.float32, jnp.bfloat16
    pts = x[:, :INPUT_CH].astype(f32)                # (N, INPUT_CH)

    def mxu(h, w, b):
        return jnp.dot(h.astype(bf16), w.T, preferred_element_type=f32) + b.T

    h = jax.nn.relu(pts @ w0.T + b0.T)               # layer 0 (f32)
    h = jax.nn.relu(mxu(h, w1, b1))
    h = jax.nn.relu(mxu(h, w2, b2))
    h = jax.nn.relu(mxu(h, w3, b3))
    h = jax.nn.relu(mxu(h, w4, b4))
    h = jax.nn.relu(pts @ w5p.T                      # skip (i == 4)
                    + jnp.dot(h.astype(bf16), w5h.T, preferred_element_type=f32)
                    + b5.T)
    h = jax.nn.relu(mxu(h, w6, b6))
    h = jax.nn.relu(mxu(h, w7, b7))
    return mxu(h, wout, bout)


if __name__ == "__main__":
    key = jax.random.PRNGKey(0)
    kx, kp = jax.random.split(key)
    N = 1000                                         # not a tile multiple on purpose
    x = jax.random.normal(kx, (N, IN_TOTAL), jnp.float32)
    params = init_params(kp)

    out = nerf_forward(x, params, tile_n=256)        # small tile for the demo shapes
    out = jax.block_until_ready(out)

    ref = nerf_forward_ref(x, params)
    assert out.shape == (N, OUTPUT_CH)
    max_err = float(jnp.max(jnp.abs(out - ref)))
    assert jnp.allclose(out, ref, atol=2e-2, rtol=2e-2), f"mismatch vs reference: {max_err}"
    print("KERNEL_OK")
</pallas_src>

<mosaic_0001>
module attributes {stable_mosaic.version = 11 : i64} {
  func.func @nerf_mlp_kernel(%arg0: i32, %arg1: memref<6x256xf32, #tpu.memory_space<vmem>>, %arg2: memref<64x3xf32, #tpu.memory_space<vmem>>, %arg3: memref<64x1xf32, #tpu.memory_space<vmem>>, %arg4: memref<64x64xbf16, #tpu.memory_space<vmem>>, %arg5: memref<64x1xf32, #tpu.memory_space<vmem>>, %arg6: memref<64x64xbf16, #tpu.memory_space<vmem>>, %arg7: memref<64x1xf32, #tpu.memory_space<vmem>>, %arg8: memref<64x64xbf16, #tpu.memory_space<vmem>>, %arg9: memref<64x1xf32, #tpu.memory_space<vmem>>, %arg10: memref<64x64xbf16, #tpu.memory_space<vmem>>, %arg11: memref<64x1xf32, #tpu.memory_space<vmem>>, %arg12: memref<64x3xf32, #tpu.memory_space<vmem>>, %arg13: memref<64x64xbf16, #tpu.memory_space<vmem>>, %arg14: memref<64x1xf32, #tpu.memory_space<vmem>>, %arg15: memref<64x64xbf16, #tpu.memory_space<vmem>>, %arg16: memref<64x1xf32, #tpu.memory_space<vmem>>, %arg17: memref<64x64xbf16, #tpu.memory_space<vmem>>, %arg18: memref<64x1xf32, #tpu.memory_space<vmem>>, %arg19: memref<4x64xbf16, #tpu.memory_space<vmem>>, %arg20: memref<4x1xf32, #tpu.memory_space<vmem>>, %arg21: memref<4x256xf32, #tpu.memory_space<vmem>>) attributes {dimension_semantics = [#tpu.dimension_semantics<parallel>], iteration_bounds = array<i64: 4>, scalar_prefetch = 0 : i64, scratch_operands = 0 : i64, tpu.core_type = #tpu.core_type<tc>, window_params = [{transform_indices = @transform_0, window_bounds = array<i64: 6, 256>}, {pipeline_mode = #tpu.pipeline_mode<synchronous>, transform_indices = @transform_1, window_bounds = array<i64: 64, 3>}, {pipeline_mode = #tpu.pipeline_mode<synchronous>, transform_indices = @transform_2, window_bounds = array<i64: 64, 1>}, {pipeline_mode = #tpu.pipeline_mode<synchronous>, transform_indices = @transform_3, window_bounds = array<i64: 64, 64>}, {pipeline_mode = #tpu.pipeline_mode<synchronous>, transform_indices = @transform_4, window_bounds = array<i64: 64, 1>}, {pipeline_mode = #tpu.pipeline_mode<synchronous>, transform_indices = @transform_5, window_bounds = array<i64: 64, 64>}, {pipeline_mode = #tpu.pipeline_mode<synchronous>, transform_indices = @transform_6, window_bounds = array<i64: 64, 1>}, {pipeline_mode = #tpu.pipeline_mode<synchronous>, transform_indices = @transform_7, window_bounds = array<i64: 64, 64>}, {pipeline_mode = #tpu.pipeline_mode<synchronous>, transform_indices = @transform_8, window_bounds = array<i64: 64, 1>}, {pipeline_mode = #tpu.pipeline_mode<synchronous>, transform_indices = @transform_9, window_bounds = array<i64: 64, 64>}, {pipeline_mode = #tpu.pipeline_mode<synchronous>, transform_indices = @transform_10, window_bounds = array<i64: 64, 1>}, {pipeline_mode = #tpu.pipeline_mode<synchronous>, transform_indices = @transform_11, window_bounds = array<i64: 64, 3>}, {pipeline_mode = #tpu.pipeline_mode<synchronous>, transform_indices = @transform_12, window_bounds = array<i64: 64, 64>}, {pipeline_mode = #tpu.pipeline_mode<synchronous>, transform_indices = @transform_13, window_bounds = array<i64: 64, 1>}, {pipeline_mode = #tpu.pipeline_mode<synchronous>, transform_indices = @transform_14, window_bounds = array<i64: 64, 64>}, {pipeline_mode = #tpu.pipeline_mode<synchronous>, transform_indices = @transform_15, window_bounds = array<i64: 64, 1>}, {pipeline_mode = #tpu.pipeline_mode<synchronous>, transform_indices = @transform_16, window_bounds = array<i64: 64, 64>}, {pipeline_mode = #tpu.pipeline_mode<synchronous>, transform_indices = @transform_17, window_bounds = array<i64: 64, 1>}, {pipeline_mode = #tpu.pipeline_mode<synchronous>, transform_indices = @transform_18, window_bounds = array<i64: 4, 64>}, {pipeline_mode = #tpu.pipeline_mode<synchronous>, transform_indices = @transform_19, window_bounds = array<i64: 4, 1>}, {transform_indices = @transform_20, window_bounds = array<i64: 4, 256>}]} {
    %c0 = arith.constant 0 : index
    %c0_0 = arith.constant 0 : index
    %0 = vector.load %arg1[%c0, %c0_0] : memref<6x256xf32, #tpu.memory_space<vmem>>, vector<3x256xf32>
    %c0_1 = arith.constant 0 : index
    %c0_2 = arith.constant 0 : index
    %1 = vector.load %arg2[%c0_1, %c0_2] : memref<64x3xf32, #tpu.memory_space<vmem>>, vector<64x3xf32>
    %2 = vector.extract_strided_slice %1 {offsets = [0, 0], sizes = [64, 1], strides = [1, 1]} : vector<64x3xf32> to vector<64x1xf32>
    %3 = vector.extract_strided_slice %0 {offsets = [0, 0], sizes = [1, 256], strides = [1, 1]} : vector<3x256xf32> to vector<1x256xf32>
    %4 = vector.broadcast %2 : vector<64x1xf32> to vector<64x256xf32>
    %5 = vector.broadcast %3 : vector<1x256xf32> to vector<64x256xf32>
    %6 = arith.mulf %4, %5 : vector<64x256xf32>
    %7 = vector.extract_strided_slice %1 {offsets = [0, 1], sizes = [64, 1], strides = [1, 1]} : vector<64x3xf32> to vector<64x1xf32>
    %8 = vector.extract_strided_slice %0 {offsets = [1, 0], sizes = [1, 256], strides = [1, 1]} : vector<3x256xf32> to vector<1x256xf32>
    %9 = vector.broadcast %7 : vector<64x1xf32> to vector<64x256xf32>
    %10 = vector.broadcast %8 : vector<1x256xf32> to vector<64x256xf32>
    %11 = arith.mulf %9, %10 : vector<64x256xf32>
    %12 = arith.addf %6, %11 : vector<64x256xf32>
    %13 = vector.extract_strided_slice %1 {offsets = [0, 2], sizes = [64, 1], strides = [1, 1]} : vector<64x3xf32> to vector<64x1xf32>
    %14 = vector.extract_strided_slice %0 {offsets = [2, 0], sizes = [1, 256], strides = [1, 1]} : vector<3x256xf32> to vector<1x256xf32>
    %15 = vector.broadcast %13 : vector<64x1xf32> to vector<64x256xf32>
    %16 = vector.broadcast %14 : vector<1x256xf32> to vector<64x256xf32>
    %17 = arith.mulf %15, %16 : vector<64x256xf32>
    %18 = arith.addf %12, %17 : vector<64x256xf32>
    %c0_3 = arith.constant 0 : index
    %c0_4 = arith.constant 0 : index
    %19 = vector.load %arg3[%c0_3, %c0_4] : memref<64x1xf32, #tpu.memory_space<vmem>>, vector<64x1xf32>
    %20 = vector.broadcast %19 : vector<64x1xf32> to vector<64x256xf32>
    %21 = arith.addf %18, %20 : vector<64x256xf32>
    %cst = arith.constant 0.000000e+00 : f32
    %22 = vector.broadcast %cst : f32 to vector<64x256xf32>
    %23 = arith.maximumf %21, %22 : vector<64x256xf32>
    %c0_5 = arith.constant 0 : index
    %c0_6 = arith.constant 0 : index
    %24 = vector.load %arg4[%c0_5, %c0_6] : memref<64x64xbf16, #tpu.memory_space<vmem>>, vector<64x64xbf16>
    %25 = arith.truncf %23 : vector<64x256xf32> to vector<64x256xbf16>
    %cst_7 = arith.constant dense<0.000000e+00> : vector<64x256xf32>
    %26 = tpu.matmul %24, %25, %cst_7 {dimension_numbers = #tpu.dot_dimension_numbers<[1], [0], [0], [1], [0, 0, 1, 1], [], []>} : vector<64x64xbf16>, vector<64x256xbf16>, vector<64x256xf32> -> vector<64x256xf32>
    %c0_8 = arith.constant 0 : index
    %c0_9 = arith.constant 0 : index
    %27 = vector.load %arg5[%c0_8, %c0_9] : memref<64x1xf32, #tpu.memory_space<vmem>>, vector<64x1xf32>
    %28 = vector.broadcast %27 : vector<64x1xf32> to vector<64x256xf32>
    %29 = arith.addf %26, %28 : vector<64x256xf32>
    %cst_10 = arith.constant 0.000000e+00 : f32
    %30 = vector.broadcast %cst_10 : f32 to vector<64x256xf32>
    %31 = arith.maximumf %29, %30 : vector<64x256xf32>
    %c0_11 = arith.constant 0 : index
    %c0_12 = arith.constant 0 : index
    %32 = vector.load %arg6[%c0_11, %c0_12] : memref<64x64xbf16, #tpu.memory_space<vmem>>, vector<64x64xbf16>
    %33 = arith.truncf %31 : vector<64x256xf32> to vector<64x256xbf16>
    %cst_13 = arith.constant dense<0.000000e+00> : vector<64x256xf32>
    %34 = tpu.matmul %32, %33, %cst_13 {dimension_numbers = #tpu.dot_dimension_numbers<[1], [0], [0], [1], [0, 0, 1, 1], [], []>} : vector<64x64xbf16>, vector<64x256xbf16>, vector<64x256xf32> -> vector<64x256xf32>
    %c0_14 = arith.constant 0 : index
    %c0_15 = arith.constant 0 : index
    %35 = vector.load %arg7[%c0_14, %c0_15] : memref<64x1xf32, #tpu.memory_space<vmem>>, vector<64x1xf32>
    %36 = vector.broadcast %35 : vector<64x1xf32> to vector<64x256xf32>
    %37 = arith.addf %34, %36 : vector<64x256xf32>
    %cst_16 = arith.constant 0.000000e+00 : f32
    %38 = vector.broadcast %cst_16 : f32 to vector<64x256xf32>
    %39 = arith.maximumf %37, %38 : vector<64x256xf32>
    %c0_17 = arith.constant 0 : index
    %c0_18 = arith.constant 0 : index
    %40 = vector.load %arg8[%c0_17, %c0_18] : memref<64x64xbf16, #tpu.memory_space<vmem>>, vector<64x64xbf16>
    %41 = arith.truncf %39 : vector<64x256xf32> to vector<64x256xbf16>
    %cst_19 = arith.constant dense<0.000000e+00> : vector<64x256xf32>
    %42 = tpu.matmul %40, %41, %cst_19 {dimension_numbers = #tpu.dot_dimension_numbers<[1], [0], [0], [1], [0, 0, 1, 1], [], []>} : vector<64x64xbf16>, vector<64x256xbf16>, vector<64x256xf32> -> vector<64x256xf32>
    %c0_20 = arith.constant 0 : index
    %c0_21 = arith.constant 0 : index
    %43 = vector.load %arg9[%c0_20, %c0_21] : memref<64x1xf32, #tpu.memory_space<vmem>>, vector<64x1xf32>
    %44 = vector.broadcast %43 : vector<64x1xf32> to vector<64x256xf32>
    %45 = arith.addf %42, %44 : vector<64x256xf32>
    %cst_22 = arith.constant 0.000000e+00 : f32
    %46 = vector.broadcast %cst_22 : f32 to vector<64x256xf32>
    %47 = arith.maximumf %45, %46 : vector<64x256xf32>
    %c0_23 = arith.constant 0 : index
    %c0_24 = arith.constant 0 : index
    %48 = vector.load %arg10[%c0_23, %c0_24] : memref<64x64xbf16, #tpu.memory_space<vmem>>, vector<64x64xbf16>
    %49 = arith.truncf %47 : vector<64x256xf32> to vector<64x256xbf16>
    %cst_25 = arith.constant dense<0.000000e+00> : vector<64x256xf32>
    %50 = tpu.matmul %48, %49, %cst_25 {dimension_numbers = #tpu.dot_dimension_numbers<[1], [0], [0], [1], [0, 0, 1, 1], [], []>} : vector<64x64xbf16>, vector<64x256xbf16>, vector<64x256xf32> -> vector<64x256xf32>
    %c0_26 = arith.constant 0 : index
    %c0_27 = arith.constant 0 : index
    %51 = vector.load %arg11[%c0_26, %c0_27] : memref<64x1xf32, #tpu.memory_space<vmem>>, vector<64x1xf32>
    %52 = vector.broadcast %51 : vector<64x1xf32> to vector<64x256xf32>
    %53 = arith.addf %50, %52 : vector<64x256xf32>
    %cst_28 = arith.constant 0.000000e+00 : f32
    %54 = vector.broadcast %cst_28 : f32 to vector<64x256xf32>
    %55 = arith.maximumf %53, %54 : vector<64x256xf32>
    %c0_29 = arith.constant 0 : index
    %c0_30 = arith.constant 0 : index
    %56 = vector.load %arg12[%c0_29, %c0_30] : memref<64x3xf32, #tpu.memory_space<vmem>>, vector<64x3xf32>
    %57 = vector.extract_strided_slice %56 {offsets = [0, 0], sizes = [64, 1], strides = [1, 1]} : vector<64x3xf32> to vector<64x1xf32>
    %58 = vector.extract_strided_slice %0 {offsets = [0, 0], sizes = [1, 256], strides = [1, 1]} : vector<3x256xf32> to vector<1x256xf32>
    %59 = vector.broadcast %57 : vector<64x1xf32> to vector<64x256xf32>
    %60 = vector.broadcast %58 : vector<1x256xf32> to vector<64x256xf32>
    %61 = arith.mulf %59, %60 : vector<64x256xf32>
    %62 = vector.extract_strided_slice %56 {offsets = [0, 1], sizes = [64, 1], strides = [1, 1]} : vector<64x3xf32> to vector<64x1xf32>
    %63 = vector.extract_strided_slice %0 {offsets = [1, 0], sizes = [1, 256], strides = [1, 1]} : vector<3x256xf32> to vector<1x256xf32>
    %64 = vector.broadcast %62 : vector<64x1xf32> to vector<64x256xf32>
    %65 = vector.broadcast %63 : vector<1x256xf32> to vector<64x256xf32>
    %66 = arith.mulf %64, %65 : vector<64x256xf32>
    %67 = arith.addf %61, %66 : vector<64x256xf32>
    %68 = vector.extract_strided_slice %56 {offsets = [0, 2], sizes = [64, 1], strides = [1, 1]} : vector<64x3xf32> to vector<64x1xf32>
    %69 = vector.extract_strided_slice %0 {offsets = [2, 0], sizes = [1, 256], strides = [1, 1]} : vector<3x256xf32> to vector<1x256xf32>
    %70 = vector.broadcast %68 : vector<64x1xf32> to vector<64x256xf32>
    %71 = vector.broadcast %69 : vector<1x256xf32> to vector<64x256xf32>
    %72 = arith.mulf %70, %71 : vector<64x256xf32>
    %73 = arith.addf %67, %72 : vector<64x256xf32>
    %c0_31 = arith.constant 0 : index
    %c0_32 = arith.constant 0 : index
    %74 = vector.load %arg13[%c0_31, %c0_32] : memref<64x64xbf16, #tpu.memory_space<vmem>>, vector<64x64xbf16>
    %75 = arith.truncf %55 : vector<64x256xf32> to vector<64x256xbf16>
    %cst_33 = arith.constant dense<0.000000e+00> : vector<64x256xf32>
    %76 = tpu.matmul %74, %75, %cst_33 {dimension_numbers = #tpu.dot_dimension_numbers<[1], [0], [0], [1], [0, 0, 1, 1], [], []>} : vector<64x64xbf16>, vector<64x256xbf16>, vector<64x256xf32> -> vector<64x256xf32>
    %77 = arith.addf %73, %76 : vector<64x256xf32>
    %c0_34 = arith.constant 0 : index
    %c0_35 = arith.constant 0 : index
    %78 = vector.load %arg14[%c0_34, %c0_35] : memref<64x1xf32, #tpu.memory_space<vmem>>, vector<64x1xf32>
    %79 = vector.broadcast %78 : vector<64x1xf32> to vector<64x256xf32>
    %80 = arith.addf %77, %79 : vector<64x256xf32>
    %cst_36 = arith.constant 0.000000e+00 : f32
    %81 = vector.broadcast %cst_36 : f32 to vector<64x256xf32>
    %82 = arith.maximumf %80, %81 : vector<64x256xf32>
    %c0_37 = arith.constant 0 : index
    %c0_38 = arith.constant 0 : index
    %83 = vector.load %arg15[%c0_37, %c0_38] : memref<64x64xbf16, #tpu.memory_space<vmem>>, vector<64x64xbf16>
    %84 = arith.truncf %82 : vector<64x256xf32> to vector<64x256xbf16>
    %cst_39 = arith.constant dense<0.000000e+00> : vector<64x256xf32>
    %85 = tpu.matmul %83, %84, %cst_39 {dimension_numbers = #tpu.dot_dimension_numbers<[1], [0], [0], [1], [0, 0, 1, 1], [], []>} : vector<64x64xbf16>, vector<64x256xbf16>, vector<64x256xf32> -> vector<64x256xf32>
    %c0_40 = arith.constant 0 : index
    %c0_41 = arith.constant 0 : index
    %86 = vector.load %arg16[%c0_40, %c0_41] : memref<64x1xf32, #tpu.memory_space<vmem>>, vector<64x1xf32>
    %87 = vector.broadcast %86 : vector<64x1xf32> to vector<64x256xf32>
    %88 = arith.addf %85, %87 : vector<64x256xf32>
    %cst_42 = arith.constant 0.000000e+00 : f32
    %89 = vector.broadcast %cst_42 : f32 to vector<64x256xf32>
    %90 = arith.maximumf %88, %89 : vector<64x256xf32>
    %c0_43 = arith.constant 0 : index
    %c0_44 = arith.constant 0 : index
    %91 = vector.load %arg17[%c0_43, %c0_44] : memref<64x64xbf16, #tpu.memory_space<vmem>>, vector<64x64xbf16>
    %92 = arith.truncf %90 : vector<64x256xf32> to vector<64x256xbf16>
    %cst_45 = arith.constant dense<0.000000e+00> : vector<64x256xf32>
    %93 = tpu.matmul %91, %92, %cst_45 {dimension_numbers = #tpu.dot_dimension_numbers<[1], [0], [0], [1], [0, 0, 1, 1], [], []>} : vector<64x64xbf16>, vector<64x256xbf16>, vector<64x256xf32> -> vector<64x256xf32>
    %c0_46 = arith.constant 0 : index
    %c0_47 = arith.constant 0 : index
    %94 = vector.load %arg18[%c0_46, %c0_47] : memref<64x1xf32, #tpu.memory_space<vmem>>, vector<64x1xf32>
    %95 = vector.broadcast %94 : vector<64x1xf32> to vector<64x256xf32>
    %96 = arith.addf %93, %95 : vector<64x256xf32>
    %cst_48 = arith.constant 0.000000e+00 : f32
    %97 = vector.broadcast %cst_48 : f32 to vector<64x256xf32>
    %98 = arith.maximumf %96, %97 : vector<64x256xf32>
    %c0_49 = arith.constant 0 : index
    %c0_50 = arith.constant 0 : index
    %99 = vector.load %arg19[%c0_49, %c0_50] : memref<4x64xbf16, #tpu.memory_space<vmem>>, vector<4x64xbf16>
    %100 = arith.truncf %98 : vector<64x256xf32> to vector<64x256xbf16>
    %cst_51 = arith.constant dense<0.000000e+00> : vector<4x256xf32>
    %101 = tpu.matmul %99, %100, %cst_51 {dimension_numbers = #tpu.dot_dimension_numbers<[1], [0], [0], [1], [0, 0, 1, 1], [], []>} : vector<4x64xbf16>, vector<64x256xbf16>, vector<4x256xf32> -> vector<4x256xf32>
    %c0_52 = arith.constant 0 : index
    %c0_53 = arith.constant 0 : index
    %102 = vector.load %arg20[%c0_52, %c0_53] : memref<4x1xf32, #tpu.memory_space<vmem>>, vector<4x1xf32>
    %103 = vector.broadcast %102 : vector<4x1xf32> to vector<4x256xf32>
    %104 = arith.addf %101, %103 : vector<4x256xf32>
    %c0_54 = arith.constant 0 : index
    %c0_55 = arith.constant 0 : index
    %105 = vector.load %arg21[%c0_54, %c0_55] : memref<4x256xf32, #tpu.memory_space<vmem>>, vector<4x256xf32>
    tpu.vector_store %arg21[%c0_54, %c0_55], %104 {strides = array<i32>} : memref<4x256xf32, #tpu.memory_space<vmem>>, vector<4x256xf32>,
    return
  }
  func.func @transform_0(%arg0: i32) -> (i32, i32) {
    %c0_i32 = arith.constant 0 : i32
    %c0_i32_0 = arith.constant 0 : i32
    return %c0_i32, %arg0 : i32, i32
  }
  func.func @transform_1(%arg0: i32) -> (i32, i32) {
    %c0_i32 = arith.constant 0 : i32
    %c0_i32_0 = arith.constant 0 : i32
    %c0_i32_1 = arith.constant 0 : i32
    return %c0_i32, %c0_i32_0 : i32, i32
  }
  func.func @transform_2(%arg0: i32) -> (i32, i32) {
    %c0_i32 = arith.constant 0 : i32
    %c0_i32_0 = arith.constant 0 : i32
    %c0_i32_1 = arith.constant 0 : i32
    return %c0_i32, %c0_i32_0 : i32, i32
  }
  func.func @transform_3(%arg0: i32) -> (i32, i32) {
    %c0_i32 = arith.constant 0 : i32
    %c0_i32_0 = arith.constant 0 : i32
    %c0_i32_1 = arith.constant 0 : i32
    return %c0_i32, %c0_i32_0 : i32, i32
  }
  func.func @transform_4(%arg0: i32) -> (i32, i32) {
    %c0_i32 = arith.constant 0 : i32
    %c0_i32_0 = arith.constant 0 : i32
    %c0_i32_1 = arith.constant 0 : i32
    return %c0_i32, %c0_i32_0 : i32, i32
  }
  func.func @transform_5(%arg0: i32) -> (i32, i32) {
    %c0_i32 = arith.constant 0 : i32
    %c0_i32_0 = arith.constant 0 : i32
    %c0_i32_1 = arith.constant 0 : i32
    return %c0_i32, %c0_i32_0 : i32, i32
  }
  func.func @transform_6(%arg0: i32) -> (i32, i32) {
    %c0_i32 = arith.constant 0 : i32
    %c0_i32_0 = arith.constant 0 : i32
    %c0_i32_1 = arith.constant 0 : i32
    return %c0_i32, %c0_i32_0 : i32, i32
  }
  func.func @transform_7(%arg0: i32) -> (i32, i32) {
    %c0_i32 = arith.constant 0 : i32
    %c0_i32_0 = arith.constant 0 : i32
    %c0_i32_1 = arith.constant 0 : i32
    return %c0_i32, %c0_i32_0 : i32, i32
  }
  func.func @transform_8(%arg0: i32) -> (i32, i32) {
    %c0_i32 = arith.constant 0 : i32
    %c0_i32_0 = arith.constant 0 : i32
    %c0_i32_1 = arith.constant 0 : i32
    return %c0_i32, %c0_i32_0 : i32, i32
  }
  func.func @transform_9(%arg0: i32) -> (i32, i32) {
    %c0_i32 = arith.constant 0 : i32
    %c0_i32_0 = arith.constant 0 : i32
    %c0_i32_1 = arith.constant 0 : i32
    return %c0_i32, %c0_i32_0 : i32, i32
  }
  func.func @transform_10(%arg0: i32) -> (i32, i32) {
    %c0_i32 = arith.constant 0 : i32
    %c0_i32_0 = arith.constant 0 : i32
    %c0_i32_1 = arith.constant 0 : i32
    return %c0_i32, %c0_i32_0 : i32, i32
  }
  func.func @transform_11(%arg0: i32) -> (i32, i32) {
    %c0_i32 = arith.constant 0 : i32
    %c0_i32_0 = arith.constant 0 : i32
    %c0_i32_1 = arith.constant 0 : i32
    return %c0_i32, %c0_i32_0 : i32, i32
  }
  func.func @transform_12(%arg0: i32) -> (i32, i32) {
    %c0_i32 = arith.constant 0 : i32
    %c0_i32_0 = arith.constant 0 : i32
    %c0_i32_1 = arith.constant 0 : i32
    return %c0_i32, %c0_i32_0 : i32, i32
  }
  func.func @transform_13(%arg0: i32) -> (i32, i32) {
    %c0_i32 = arith.constant 0 : i32
    %c0_i32_0 = arith.constant 0 : i32
    %c0_i32_1 = arith.constant 0 : i32
    return %c0_i32, %c0_i32_0 : i32, i32
  }
  func.func @transform_14(%arg0: i32) -> (i32, i32) {
    %c0_i32 = arith.constant 0 : i32
    %c0_i32_0 = arith.constant 0 : i32
    %c0_i32_1 = arith.constant 0 : i32
    return %c0_i32, %c0_i32_0 : i32, i32
  }
  func.func @transform_15(%arg0: i32) -> (i32, i32) {
    %c0_i32 = arith.constant 0 : i32
    %c0_i32_0 = arith.constant 0 : i32
    %c0_i32_1 = arith.constant 0 : i32
    return %c0_i32, %c0_i32_0 : i32, i32
  }
  func.func @transform_16(%arg0: i32) -> (i32, i32) {
    %c0_i32 = arith.constant 0 : i32
    %c0_i32_0 = arith.constant 0 : i32
    %c0_i32_1 = arith.constant 0 : i32
    return %c0_i32, %c0_i32_0 : i32, i32
  }
  func.func @transform_17(%arg0: i32) -> (i32, i32) {
    %c0_i32 = arith.constant 0 : i32
    %c0_i32_0 = arith.constant 0 : i32
    %c0_i32_1 = arith.constant 0 : i32
    return %c0_i32, %c0_i32_0 : i32, i32
  }
  func.func @transform_18(%arg0: i32) -> (i32, i32) {
    %c0_i32 = arith.constant 0 : i32
    %c0_i32_0 = arith.constant 0 : i32
    %c0_i32_1 = arith.constant 0 : i32
    return %c0_i32, %c0_i32_0 : i32, i32
  }
  func.func @transform_19(%arg0: i32) -> (i32, i32) {
    %c0_i32 = arith.constant 0 : i32
    %c0_i32_0 = arith.constant 0 : i32
    %c0_i32_1 = arith.constant 0 : i32
    return %c0_i32, %c0_i32_0 : i32, i32
  }
  func.func @transform_20(%arg0: i32) -> (i32, i32) {
    %c0_i32 = arith.constant 0 : i32
    %c0_i32_0 = arith.constant 0 : i32
    return %c0_i32, %arg0 : i32, i32
  }
}

</mosaic_0001>

<bundles_post_ra>
// kernel: tpu_custom_call.1
= control target key start
LH: loop header
LB: loop body
LE: loop exit
PB: predicated region body
PF: predicated region fallthrough
CT: control target
= control target key end

     0   :  { %s3667_s0 = inlined_call_operand.vmem [shape: f32[6,1024], index: 0, kind: input, shape index: {}]   ;;  %s3668_s1 = inlined_call_operand.vmem [shape: f32[64,3], index: 1, kind: input, shape index: {}]   ;;  %s3669_s2 = inlined_call_operand.vmem [shape: f32[64,1], index: 2, kind: input, shape index: {}]   ;;  %s3670_s3 = inlined_call_operand.vmem [shape: bf16[64,64], index: 3, kind: input, shape index: {}]   ;;  %s3671_s4 = inlined_call_operand.vmem [shape: f32[64,1], index: 4, kind: input, shape index: {}]   ;;  %s3672_s5 = inlined_call_operand.vmem [shape: bf16[64,64], index: 5, kind: input, shape index: {}]   ;;  %s3673_s6 = inlined_call_operand.vmem [shape: f32[64,1], index: 6, kind: input, shape index: {}]   ;;  %s3674_s7 = inlined_call_operand.vmem [shape: bf16[64,64], index: 7, kind: input, shape index: {}]   ;;  %s3675_s8 = inlined_call_operand.vmem [shape: f32[64,1], index: 8, kind: input, shape index: {}]   ;;  %s3676_s9 = inlined_call_operand.vmem [shape: bf16[64,64], index: 9, kind: input, shape index: {}]   ;;  %s3677_s10 = inlined_call_operand.vmem [shape: f32[64,1], index: 10, kind: input, shape index: {}]   ;;  %s3678_s11 = inlined_call_operand.vmem [shape: f32[64,3], index: 11, kind: input, shape index: {}]   ;;  %s3679_s12 = inlined_call_operand.vmem [shape: bf16[64,64], index: 12, kind: input, shape index: {}]   ;;  %s3680_s13 = inlined_call_operand.vmem [shape: f32[64,1], index: 13, kind: input, shape index: {}]   ;;  %s3681_s14 = inlined_call_operand.vmem [shape: bf16[64,64], index: 14, kind: input, shape index: {}]   ;;  %s3682_s15 = inlined_call_operand.vmem [shape: f32[64,1], index: 15, kind: input, shape index: {}]   ;;  %s3683_s16 = inlined_call_operand.vmem [shape: bf16[64,64], index: 16, kind: input, shape index: {}]   ;;  %s3684_s17 = inlined_call_operand.vmem [shape: f32[64,1], index: 17, kind: input, shape index: {}]   ;;  %s3685_s18 = inlined_call_operand.vmem [shape: bf16[4,64], index: 18, kind: input, shape index: {}]   ;;  %s3686_s19 = inlined_call_operand.vmem [shape: f32[4,1], index: 19, kind: input, shape index: {}]   ;;  %s3687_s20 = inlined_call_operand.hbm [shape: f32[4,1024], index: 20, kind: output, shape index: {}]  }
   0x1   :  { %3702 = sst [smem:[#allocation15_spill]] %s3667_s0 }
   0x2   :  { %3703 = sst [smem:[#allocation16_spill]] %s3668_s1 }
   0x3   :  { %3704 = sst [smem:[#allocation17_spill]] %s3669_s2 }
   0x4   :  { %3705 = sst [smem:[#allocation18_spill]] %s3670_s3 }
   0x5   :  { %3706 = sst [smem:[#allocation19_spill]] %s3671_s4 }
   0x6   :  { %3707 = sst [smem:[#allocation20_spill]] %s3672_s5 }
   0x7   :  { %3708 = sst [smem:[#allocation21_spill]] %s3673_s6 }
   0x8   :  { %25 = vsyncpa [#allocation3], 0 }
   0x9   :  { %27 = vsyncpa [#allocation3 + $0x1], 0  ;;  %s2939_s1 = smov 0   ;;  %s2941_s22 = smov 0  }
   0xa   :  { %s2943_s23 = smov 0   ;;  %s2945_s24 = smov 0  }
   0xb LB: > { %3709 = sst [smem:[#allocation5_spill]] %s2816_s1  ;;  %s2960_s2 = sadd.s32 4294967295, %s2828_s24   ;;  %s2828_s24 = sphi %s2945_s24, %s3736_s24   ;;  %s2824_s23 = sphi %s2943_s23, %s3738_s23   ;;  %s2820_s22 = sphi %s2941_s22, %s3740_s22   ;;  %s2816_s1 = sphi %s2939_s1, %s3739_s1  }
   0xc   : > { %3710 = sst [smem:[#allocation6_spill]] %s2824_s23  ;;  %s2588_s25 = sadd.s32 4294967294, %s2828_s24  }
   0xd   : > { %3711 = sst [smem:[#allocation7_spill]] %s2828_s24  ;;  %s2964_s3 = sadd.s32 1, %s2828_s24  }
   0xe   : > { %3712 = sst [smem:[#allocation8_spill]] %s2964_s3  ;;  %s465_s26 = sadd.s32 1, %s2824_s23 }
   0xf   : > { %s462_s27 = ssub.s32 %s2828_s24, %s2964_s3  ;;  %p475_p0 = scmp.ne.s32.totalorder %s2824_s23, %s2820_s22 }
  0x10   : > { %p463_p1 = scmp.eq.s32.totalorder %s462_s27, 0  ;;  %p476_p2 = scmp.eq.s32.totalorder %s2960_s2, 3 }
  0x11   : > { %p481_p3 = scmp.ne.s32.totalorder %s2820_s22, %s2816_s1  ;;  %p482_p4 = scmp.eq.s32.totalorder %s2588_s25, 3 }
  0x12   : > { %s2975_s28 = scalar_select %p463_p1, %s2824_s23, %s465_s26  }
  0x13   : > { %p2977_p5 = por %p476_p2, %p475_p0  ;;  %p2981_p6 = por %p482_p4, %p481_p3 }
  0x14   : > { %3713 = sst [smem:[#allocation9_spill]] %s2975_s28  ;;  %p2591_p7 = scmp.ge.s32.totalorder %s2828_s24, 1 }
  0x15   : > { %s3715_s29 = scalar_select %p2981_p6, 1, 0 }
  0x16   : > { %p566_p8 = scmp.lt.s32.totalorder %s2828_s24, 5 }
  0x17   : > { %3716 = sst [smem:[#allocation10_spill]] %s3715_s29 }
  0x18   : > { %p567_p9 = pnand %p2591_p7, %p566_p8 }
  0x1a   : > { %570 = sbr.rel (%p567_p9) target bundleno = 2172 (0x87c), region = 100 }
  0x1f   : > { %s3717_s21 = sld [smem:[#allocation16_spill]]  ;;  %v2830_v1 = vmov 2   ;;  %v2831_v2 = vmov 1   ;;  %v3700_v5 = vmov 0   ;;  %v1324_v25 = vld [vmem:[%s3675_s8 + $0x38] sm:$0xff]  ;;  %v1322_v27 = vld [vmem:[%s3675_s8 + $0x28] sm:$0xff]  ;;  %v682_v53 = vlaneseq }
  0x20   : > { %2709 = vset.pattern.permute.xlu0 %v2830_v1  ;;  %2708 = vset.pattern.permute.xlu1 %v2831_v2  ;;  %s3718_s28 = sld [smem:[#allocation17_spill]]  ;;  %v1320_v29 = vld [vmem:[%s3675_s8 + $0x18] sm:$0xff]  ;;  %v1318_v31 = vld [vmem:[%s3675_s8 + $0x8] sm:$0xff]  ;;  %v1323_v43 = vld [vmem:[%s3675_s8 + $0x30] sm:$0xff]  ;;  %vm1014_vm0 = vcmask 523264  }
  0x21   : > { %1059 = vmatprep.mubr.bf16.mxu0 %v3700_v5  ;;  %1079 = vmatprep.mubr.bf16.mxu1 %v3700_v5  ;;  %s3719_s30 = sld [smem:[#allocation19_spill]]  ;;  %v1509_v33 = vld [vmem:[%s3677_s10 + $0x38] sm:$0xff]  ;;  %v1507_v35 = vld [vmem:[%s3677_s10 + $0x28] sm:$0xff]  ;;  %v1321_v46 = vld [vmem:[%s3675_s8 + $0x20] sm:$0xff]  ;;  %v683_v56 = vshrl.u32 %v682_v53, 7 }
  0x22   : > { %s3720_s6 = sld [smem:[#allocation21_spill]]  ;;  %v1505_v37 = vld [vmem:[%s3677_s10 + $0x18] sm:$0xff]  ;;  %v1503_v39 = vld [vmem:[%s3677_s10 + $0x8] sm:$0xff]  ;;  %v1319_v49 = vld [vmem:[%s3675_s8 + $0x10] sm:$0xff] }
  0x23   : > { %v1317_v52 = vld [vmem:[%s3675_s8] sm:$0xff]  ;;  %v1508_v55 = vld [vmem:[%s3677_s10 + $0x30] sm:$0xff]  ;;  %s3721_s29 = sld [smem:[#allocation15_spill]]  ;;  %v740_v60 = vsub.s32 1, %v683_v56  ;;  %v684_v61 = vsub.s32 0, %v683_v56 }
  0x24   : > { %v1506_v59 = vld [vmem:[%s3677_s10 + $0x20] sm:$0xff]  ;;  %s3722_s0 = sld [smem:[#allocation18_spill]] }
  0x25   : > { %v640_v0 = vld [vmem:[%s3717_s21 + $0x30] sm:$0xff]  ;;  %v641_v3 = vld [vmem:[%s3717_s21 + $0x38] sm:$0xff]  ;;  %v638_v4 = vld [vmem:[%s3717_s21 + $0x20] sm:$0xff]  ;;  %s3723_s5 = sld [smem:[#allocation20_spill]] }
  0x26   : > { %803 = vperm.xlu0 %2709, %v640_v0   ;;  %731 = vperm.xlu1 %2708, %v640_v0   ;;  %v637_v6 = vld [vmem:[%s3717_s21 + $0x18] sm:$0xff]  ;;  %v636_v7 = vld [vmem:[%s3717_s21 + $0x10] sm:$0xff]  ;;  %v635_v8 = vld [vmem:[%s3717_s21 + $0x8] sm:$0xff] }
  0x27   : > { %v639_v9 = vld [vmem:[%s3717_s21 + $0x28] sm:$0xff]  ;;  %v856_v10 = vld [vmem:[%s3718_s28 + $0x30] sm:$0xff]  ;;  %v857_v11 = vld [vmem:[%s3718_s28 + $0x38] sm:$0xff] }
  0x28   : > { %v634_v12 = vld [vmem:[%s3717_s21] sm:$0xff]  ;;  %v852_v13 = vld [vmem:[%s3718_s28 + $0x10] sm:$0xff]  ;;  %v851_v14 = vld [vmem:[%s3718_s28 + $0x8] sm:$0xff]  ;;  %s2593_s21 = sshll.u32 %s2960_s2, 1 }
  0x29   : > { %v953_v15 = vld [vmem:[%s3719_s30 + $0x38] sm:$0xff]  ;;  %v951_v16 = vld [vmem:[%s3719_s30 + $0x28] sm:$0xff]  ;;  %v854_v17 = vld [vmem:[%s3718_s28 + $0x20] sm:$0xff]  ;;  %p625_p10 = scmp.lt.s32.totalorder %s2593_s21, 7 }
  0x2a   : > { %735 = vperm.xlu1 %2708, %v641_v3   ;;  %795 = vperm.xlu0 %2709, %v638_v4   ;;  %v949_v18 = vld [vmem:[%s3719_s30 + $0x18] sm:$0xff]  ;;  %v855_v19 = vld [vmem:[%s3718_s28 + $0x28] sm:$0xff]  ;;  %v850_v28 = vld [vmem:[%s3718_s28] sm:$0xff] }
  0x2b   : > { %v947_v20 = vld [vmem:[%s3719_s30 + $0x8] sm:$0xff]  ;;  %v1139_v21 = vld [vmem:[%s3720_s6 + $0x38] sm:$0xff]  ;;  %v952_v30 = vld [vmem:[%s3719_s30 + $0x30] sm:$0xff]  ;;  %s3742_s21 = smov (!%p625_p10, %s2593_s21), 7 }
  0x2c   : > { %v1137_v22 = vld [vmem:[%s3720_s6 + $0x28] sm:$0xff]  ;;  %v1135_v23 = vld [vmem:[%s3720_s6 + $0x18] sm:$0xff]  ;;  %v950_v32 = vld [vmem:[%s3719_s30 + $0x20] sm:$0xff]  ;;  %s2594_s23 = sshll.u32 %s3742_s21, 3 }
  0x2d   : > { %v1133_v24 = vld [vmem:[%s3720_s6 + $0x8] sm:$0xff]  ;;  %v853_v26 = vld [vmem:[%s3718_s28 + $0x18] sm:$0xff]  ;;  %v948_v34 = vld [vmem:[%s3719_s30 + $0x10] sm:$0xff]  ;;  %s628_s24 = scalar_lea.vmem %s3721_s29, %s2594_s23  ;;  %s621_s29 = sand.u32 1, %s2820_s22  }
  0x2e   : > { %2710 = vset.pattern.permute.xlu1 %v2830_v1  ;;  %791 = vperm.xlu0 %2709, %v637_v6   ;;  %v946_v36 = vld [vmem:[%s3719_s30] sm:$0xff]  ;;  %v1138_v38 = vld [vmem:[%s3720_s6 + $0x30] sm:$0xff]  ;;  %v633_v63 = vld [vmem:[%s628_s24 + $0x8] sm:$0x7]  ;;  %s2515_s27 = scalar_lea.sflag [#allocation3], %s621_s29 }
  0x2f   : > { %807 = vperm.xlu1 %2710, %v641_v3   ;;  %v1136_v40 = vld [vmem:[%s3720_s6 + $0x20] sm:$0xff]  ;;  %v1134_v41 = vld [vmem:[%s3720_s6 + $0x10] sm:$0xff] }
  0x30   : > { %v1132_v42 = vld [vmem:[%s3720_s6] sm:$0xff] }
  0x31   : > { %v632_v62 = vld [vmem:[%s628_s24] sm:$0x7]  ;;  %s2657_s24 = sshll.u32 %s2960_s2, 7  ;;  %s2833_s2 = smov [#allocation2]  }
  0x32   : > { %2717 = vset.pattern.permute.xlu0 %v2831_v2  ;;  %s3632_s1 = scalar_lea.hbm %s3687_s20, %s2657_s24 }
  0x33   : > { %2711 = vset.pattern.permute.xlu1 %v3700_v5  ;;  %715 = vperm.xlu0 %2717, %v636_v7  }
  0x34   : > { %664 = vperm.xlu1 %2711, %v638_v4  }
  0x37   : > { %711 = vperm.xlu0 %2717, %v635_v8  }
  0x38   : > { %2712 = vset.pattern.permute.xlu1 %v2831_v2 }
  0x39   : > { %723 = vperm.xlu1 %2712, %v638_v4   ;;  %v1504_v4 = vld [vmem:[%s3677_s10 + $0x10] sm:$0xff] }
  0x3b   : > { %2720 = vset.pattern.permute.xlu0 %v3700_v5 }
  0x3c   : > { %674 = vperm.xlu0 %2720, %v640_v0  }
  0x3d   : > { %727 = vperm.xlu1 %2712, %v639_v9  }
  0x40   : > { %679 = vperm.xlu0 %2720, %v641_v3   ;;  %v812_v3 = vsub.s32 2, %v683_v56 }
  0x41   : > { %2713 = vset.pattern.permute.xlu1 %v2830_v1 }
  0x42   : > { %799 = vperm.xlu1 %2713, %v639_v9  }
  0x44   : > { %669 = vperm.xlu0 %2720, %v639_v9   ;;  %v3168_v9 = vrot.slane %v633_v63, %v684_v61 }
  0x46   : > { %2714 = vset.pattern.permute.xlu1 %v3700_v5 }
  0x47   : > { %890 = vperm.xlu1 %2714, %v856_v10  }
  0x48   : > { %895 = vperm.xlu0 %2720, %v857_v11  }
  0x4b   : > { %654 = vperm.xlu1 %2714, %v636_v7  }
  0x4c   : > { %644 = vperm.xlu0 %2720, %v634_v12  }
  0x4f   : > { %659 = vperm.xlu1 %2714, %v637_v6  }
  0x50   : > { %870 = vperm.xlu0 %2720, %v852_v13  }
  0x53   : > { %2715 = vset.pattern.permute.xlu1 %v2831_v2 }
  0x54   : > { %719 = vperm.xlu1 %2715, %v637_v6   ;;  %865 = vperm.xlu0 %2720, %v851_v14   ;;  %v3162_v6 = vrot.slane %v632_v62, %v740_v60  ;;  %v1502_v14 = vld [vmem:[%s3677_s10] sm:$0xff] }
  0x58   : > { %2716 = vset.pattern.permute.xlu1 %v2830_v1  ;;  %991 = vperm.xlu0 %2720, %v953_v15  }
  0x59   : > { %787 = vperm.xlu1 %2716, %v636_v7   ;;  %v3164_v7 = vrot.slane %v633_v63, %v740_v60 }
  0x5c   : > { %981 = vperm.xlu0 %2720, %v951_v16  }
  0x5d   : > { %2718 = vset.pattern.permute.xlu1 %v3700_v5 }
  0x5e   : > { %880 = vperm.xlu1 %2718, %v854_v17   ;;  %v3179_v17 = vrot.slane %v632_v62, %v812_v3 }
  0x60   : > { %971 = vperm.xlu0 %2720, %v949_v18   ;;  %v3181_v18 = vrot.slane %v633_v63, %v812_v3 }
  0x62   : > { %885 = vperm.xlu1 %2718, %v855_v19  }
  0x64   : > { %961 = vperm.xlu0 %2720, %v947_v20  }
  0x66   : > { %649 = vperm.xlu1 %2718, %v635_v8  }
  0x68   : > { %1177 = vperm.xlu0 %2720, %v1139_v21  }
  0x6a   : > { %2719 = vset.pattern.permute.xlu1 %v2831_v2 }
  0x6b   : > { %707 = vperm.xlu1 %2719, %v634_v12  }
  0x6c   : > { %1167 = vperm.xlu0 %2720, %v1137_v22  }
  0x6f   : > { %2721 = vset.pattern.permute.xlu1 %v2830_v1 }
  0x70   : > { %1157 = vperm.xlu0 %2720, %v1135_v23   ;;  %779 = vperm.xlu1 %2721, %v634_v12  }
  0x74   : > { %1147 = vperm.xlu0 %2720, %v1133_v24   ;;  %783 = vperm.xlu1 %2721, %v635_v8   ;;  %v3166_v8 = vrot.slane %v632_v62, %v684_v61 }
  0x78   : > { %1362 = vperm.xlu0 %2720, %v1324_v25   ;;  %2722 = vset.pattern.permute.xlu1 %v3700_v5 }
  0x79   : > { %875 = vperm.xlu1 %2722, %v853_v26  }
  0x7c   : > { %1352 = vperm.xlu0 %2720, %v1322_v27  }
  0x7d   : > { %860 = vperm.xlu1 %2722, %v850_v28  }
  0x80   : > { %1342 = vperm.xlu0 %2720, %v1320_v29  }
  0x81   : > { %986 = vperm.xlu1 %2722, %v952_v30  }
  0x84   : > { %1332 = vperm.xlu0 %2720, %v1318_v31   ;;  %v1677_v31 = vld [vmem:[%s3678_s11 + $0x30] sm:$0xff] }
  0x85   : > { %976 = vperm.xlu1 %2722, %v950_v32  }
  0x88   : > { %1547 = vperm.xlu0 %2720, %v1509_v33  }
  0x89   : > { %966 = vperm.xlu1 %2722, %v948_v34  }
  0x8c   : > { %1537 = vperm.xlu0 %2720, %v1507_v35  }
  0x8d   : > { %956 = vperm.xlu1 %2722, %v946_v36  }
  0x90   : > { %1527 = vperm.xlu0 %2720, %v1505_v37  }
  0x91   : > { %1172 = vperm.xlu1 %2722, %v1138_v38  }
  0x94   : > { %1517 = vperm.xlu0 %2720, %v1503_v39  }
  0x95   : > { %1162 = vperm.xlu1 %2722, %v1136_v40  }
  0x98   : > { %2724 = vset.pattern.permute.xlu0 %v2831_v2 }
  0x99   : > { %1152 = vperm.xlu1 %2722, %v1134_v41  }
  0x9d   : > { %1142 = vperm.xlu1 %2722, %v1132_v42  }
  0xa1   : > { %v732_v44 = vpop.permute.xlu1 %731  ;;  %1357 = vperm.xlu1 %2722, %v1323_v43   ;;  %v804_v45 = vpop.permute.xlu0 %803 }
  0xa2   : > { %v758_v15 = vmul.f32 %v3162_v6, %v732_v44  ;;  %v759_v16 = vmul.f32 %v3164_v7, %v732_v44  ;;  %v830_v24 = vmul.f32 %v3179_v17, %v804_v45  ;;  %v831_v25 = vmul.f32 %v3181_v18, %v804_v45 }
  0xa5   : > { %v736_v47 = vpop.permute.xlu1 %735  ;;  %1347 = vperm.xlu1 %2722, %v1321_v46   ;;  %v3132_v48 = vpop.permute.xlu0 %795 }
  0xa6   : > { %v760_v20 = vmul.f32 %v3162_v6, %v736_v47  ;;  %v761_v21 = vmul.f32 %v3164_v7, %v736_v47 }
  0xa9   : > { %1337 = vperm.xlu1 %2722, %v1319_v49   ;;  %v3137_v50 = vpop.permute.xlu0 %791 }
  0xaa   : > { %v808_v51 = vpop.permute.xlu1 %807 }
  0xab   : > { %v832_v33 = vmul.f32 %v3179_v17, %v808_v51  ;;  %v833_v34 = vmul.f32 %v3181_v18, %v808_v51 }
  0xad   : > { %1327 = vperm.xlu1 %2722, %v1317_v52  }
  0xae   : > { %v3142_v54 = vpop.permute.xlu0 %715 }
  0xaf   : > { %v3147_v57 = vpop.permute.xlu1 %664 }
  0xb0   : > { %v698_v61 = vmul.f32 %v3166_v8, %v3147_v57  ;;  %v699_v62 = vmul.f32 %v3168_v9, %v3147_v57 }
  0xb1   : > { %1542 = vperm.xlu1 %2722, %v1508_v55  }
  0xb2   : > { %v3152_v58 = vpop.permute.xlu0 %711 }
  0xb4   : > { %v3157_v0 = vpop.permute.xlu1 %723 }
  0xb5   : > { %1532 = vperm.xlu1 %2722, %v1506_v59   ;;  %v754_v59 = vmul.f32 %v3162_v6, %v3157_v0  ;;  %v755_v60 = vmul.f32 %v3164_v7, %v3157_v0 }
  0xb7   : > { %v675_v10 = vpop.permute.xlu0 %674 }
  0xb8   : > { %v3170_v11 = vpop.permute.xlu1 %727  ;;  %v702_v12 = vmul.f32 %v3166_v8, %v675_v10  ;;  %v703_v13 = vmul.f32 %v3168_v9, %v675_v10  ;;  %v826_v10 = vmul.f32 %v3179_v17, %v3132_v48 }
  0xb9   : > { %1522 = vperm.xlu1 %2722, %v1504_v4   ;;  %v756_v0 = vmul.f32 %v3162_v6, %v3170_v11 }
  0xba   : > { %v774_v26 = vadd.f32 %v758_v15, %v702_v12  ;;  %v775_v27 = vadd.f32 %v759_v16, %v703_v13  ;;  %v827_v12 = vmul.f32 %v3181_v18, %v3132_v48  ;;  %v770_v13 = vadd.f32 %v754_v59, %v698_v61 }
  0xbb   : > { %v680_v19 = vpop.permute.xlu0 %679  ;;  %v757_v15 = vmul.f32 %v3164_v7, %v3170_v11  ;;  %v824_v59 = vmul.f32 %v3179_v17, %v3137_v50 }
  0xbc   : > { %v704_v22 = vmul.f32 %v3166_v8, %v680_v19  ;;  %v705_v23 = vmul.f32 %v3168_v9, %v680_v19  ;;  %v846_v35 = vadd.f32 %v830_v24, %v774_v26  ;;  %v847_v36 = vadd.f32 %v831_v25, %v775_v27 }
  0xbd   : > { %v800_v28 = vpop.permute.xlu1 %799  ;;  %1512 = vperm.xlu1 %2722, %v1502_v14   ;;  %v771_v14 = vadd.f32 %v755_v60, %v699_v62  ;;  %v825_v60 = vmul.f32 %v3181_v18, %v3137_v50 }
  0xbe   : > { %v776_v29 = vadd.f32 %v760_v20, %v704_v22  ;;  %v777_v30 = vadd.f32 %v761_v21, %v705_v23  ;;  %v828_v20 = vmul.f32 %v3179_v17, %v800_v28  ;;  %v829_v21 = vmul.f32 %v3181_v18, %v800_v28 }
  0xbf   : > { %v670_v32 = vpop.permute.xlu0 %669  ;;  %v842_v22 = vadd.f32 %v826_v10, %v770_v13  ;;  %v843_v23 = vadd.f32 %v827_v12, %v771_v14 }
  0xc0   : > { %v848_v38 = vadd.f32 %v832_v33, %v776_v29  ;;  %v849_v39 = vadd.f32 %v833_v34, %v777_v30  ;;  %v700_v63 = vmul.f32 %v3166_v8, %v670_v32  ;;  %v701_v3 = vmul.f32 %v3168_v9, %v670_v32 }
  0xc1   : > { %1711 = vperm.xlu1 %2722, %v1677_v31  }
  0xc2   : > { %v891_v37 = vpop.permute.xlu1 %890  ;;  %v772_v57 = vadd.f32 %v756_v0, %v700_v63  ;;  %v773_v16 = vadd.f32 %v757_v15, %v701_v3  ;;  %v749_v63 = vmul.f32 %v3164_v7, %v3152_v58 }
  0xc3   : > { %v910_v40 = vadd.f32 %v891_v37, %v846_v35  ;;  %v911_v41 = vadd.f32 %v891_v37, %v847_v36  ;;  %v896_v42 = vpop.permute.xlu0 %895  ;;  %v750_v37 = vmul.f32 %v3162_v6, %v3142_v54 }
  0xc4   : > { %v912_v43 = vadd.f32 %v896_v42, %v848_v38  ;;  %v913_v44 = vadd.f32 %v896_v42, %v849_v39  ;;  %v844_v48 = vadd.f32 %v828_v20, %v772_v57  ;;  %v845_v26 = vadd.f32 %v829_v21, %v773_v16 }
  0xc5   : > { %2723 = vset.pattern.permute.xlu1 %v2831_v2  ;;  %v927_v45 = vmax.f32 %v911_v41, 0.0  ;;  %v926_v46 = vmax.f32 %v910_v40, 0.0  ;;  %v751_v38 = vmul.f32 %v3164_v7, %v3142_v54 }
  0xc6   : > { %v928_v47 = vmax.f32 %v912_v43, 0.0  ;;  %v929_v49 = vmax.f32 %v913_v44, 0.0  ;;  %v655_v52 = vpop.permute.xlu1 %654  ;;  %1760 = vperm.xlu1 %2723, %v1677_v31  }
  0xc7   : > { %v694_v39 = vmul.f32 %v3166_v8, %v655_v52  ;;  %v695_v40 = vmul.f32 %v3168_v9, %v655_v52  ;;  %v645_v41 = vpop.permute.xlu0 %644 }
  0xc8   : > { %v945_v51 = vpack.c.bf16 %v929_v49, %v927_v45  ;;  %v944_v53 = vpack.c.bf16 %v928_v47, %v926_v46  ;;  %v690_v0 = vmul.f32 %v3166_v8, %v645_v41  ;;  %v691_v15 = vmul.f32 %v3168_v9, %v645_v41 }
  0xc9   : > { %v766_v47 = vadd.f32 %v750_v37, %v694_v39  ;;  %v767_v49 = vadd.f32 %v751_v38, %v695_v40 }
  0xca   : > { %v660_v55 = vpop.permute.xlu1 %659  ;;  %2725 = vset.pattern.permute.xlu1 %v2830_v1  ;;  %1035 = vmatprep.subr.bf16.mxu0 %v945_v51 }
  0xcb   : > { %2658 = vmatprep.subr.bf16.mxu1 %v945_v51  ;;  %1824 = vperm.xlu1 %2725, %v1677_v31   ;;  %v696_v51 = vmul.f32 %v3166_v8, %v660_v55  ;;  %v697_v54 = vmul.f32 %v3168_v9, %v660_v55  ;;  %v871_v10 = vpop.permute.xlu0 %870 }
  0xcc   : > { %1036 = vmatpush1.bf16.msra.mxu0 %v944_v53  ;;  %2662 = vmatpush1.bf16.msra.mxu1 %v944_v53 }
  0xcf   : > { %v720_v56 = vpop.permute.xlu1 %719 }
  0xd0   : > { %v752_v44 = vmul.f32 %v3162_v6, %v720_v56  ;;  %v753_v45 = vmul.f32 %v3164_v7, %v720_v56  ;;  %v748_v56 = vmul.f32 %v3162_v6, %v3152_v58 }
  0xd2   : > { %v768_v3 = vadd.f32 %v752_v44, %v696_v51  ;;  %v769_v55 = vadd.f32 %v753_v45, %v697_v54  ;;  %v2740_v51 = vld [vmem:[%s3722_s0] sm:$0xff]   ;;  %v2741_v54 = vld [vmem:[%s3722_s0 + $0x10] sm:$0xff]  }
  0xd4   : > { %v788_v4 = vpop.permute.xlu1 %787 }
  0xd5   : > { %v822_v42 = vmul.f32 %v3179_v17, %v788_v4  ;;  %v823_v43 = vmul.f32 %v3181_v18, %v788_v4 }
  0xd7   : > { %v838_v61 = vadd.f32 %v822_v42, %v766_v47  ;;  %v839_v62 = vadd.f32 %v823_v43, %v767_v49 }
  0xd9   : > { %v881_v19 = vpop.permute.xlu1 %880  ;;  %v903_v20 = vadd.f32 %v871_v10, %v839_v62  ;;  %v902_v21 = vadd.f32 %v871_v10, %v838_v61 }
  0xda   : > { %v906_v24 = vadd.f32 %v881_v19, %v842_v22  ;;  %v907_v25 = vadd.f32 %v881_v19, %v843_v23 }
  0xdc   : > { %v922_v31 = vmax.f32 %v906_v24, 0.0  ;;  %v923_v32 = vmax.f32 %v907_v25, 0.0  ;;  %v840_v24 = vadd.f32 %v824_v59, %v768_v3  ;;  %v841_v25 = vadd.f32 %v825_v60, %v769_v55 }
  0xdd   : > { %v886_v27 = vpop.permute.xlu1 %885 }
  0xde   : > { %v908_v29 = vadd.f32 %v886_v27, %v844_v48  ;;  %v909_v30 = vadd.f32 %v886_v27, %v845_v26 }
  0xe0   : > { %v924_v33 = vmax.f32 %v908_v29, 0.0  ;;  %v925_v11 = vmax.f32 %v909_v30, 0.0 }
  0xe1   : > { %v650_v34 = vpop.permute.xlu1 %649 }
  0xe2   : > { %v943_v35 = vpack.c.bf16 %v925_v11, %v923_v32  ;;  %v942_v36 = vpack.c.bf16 %v924_v33, %v922_v31  ;;  %v692_v53 = vmul.f32 %v3166_v8, %v650_v34  ;;  %v693_v52 = vmul.f32 %v3168_v9, %v650_v34  ;;  %v866_v31 = vpop.permute.xlu0 %865 }
  0xe3   : > { %v919_v11 = vmax.f32 %v903_v20, 0.0  ;;  %v918_v34 = vmax.f32 %v902_v21, 0.0 }
  0xe4   : > { %1037 = vmatprep.subr.bf16.mxu0 %v943_v35  ;;  %2659 = vmatprep.subr.bf16.mxu1 %v943_v35  ;;  %v764_v57 = vadd.f32 %v748_v56, %v692_v53  ;;  %v765_v16 = vadd.f32 %v749_v63, %v693_v52  ;;  %v2742_v53 = vld [vmem:[%s3722_s0 + $0x8] sm:$0xff]   ;;  %v2743_v52 = vld [vmem:[%s3722_s0 + $0x18] sm:$0xff]   ;;  %s2592_s0 = sshll.u32 %s621_s29, 3 }
  0xe5   : > { %1038 = vmatpush1.bf16.msra.mxu0 %v942_v36  ;;  %2663 = vmatpush1.bf16.msra.mxu1 %v942_v36  ;;  %s623_s25 = scalar_lea.vmem [#allocation2], %s2592_s0  ;;  %s2772_s0 = sshll.u32 %s2833_s2, 4  ;;  %s2773_s0 = int_to_ptr.vmem [resolvable:$false] %s2772_s0 }
  0xe6   : > { %v708_v28 = vpop.permute.xlu1 %707  ;;  %v992_v61 = vpop.permute.xlu0 %991  ;;  %s2529_s21 = sshll.u32 %s623_s25, 4  ;;  %s2530_s21 = int_to_ptr.vmem [resolvable:$true] %s2529_s21 }
  0xe7   : > { %v746_v12 = vmul.f32 %v3162_v6, %v708_v28  ;;  %v747_v13 = vmul.f32 %v3164_v7, %v708_v28  ;;  %s2768_s3 = scalar_lea.vmem %s2530_s21, 128  ;;  %p2775_p0 = scmp.lt.s32.totalorder %s2530_s21, %s2773_s0 }
  0xe8   : > { %p2769_p11 = scmp.ne.s32.totalorder %s2530_s21, %s2768_s3 }
  0xe9   : > { %v762_v48 = vadd.f32 %v746_v12, %v690_v0  ;;  %v763_v26 = vadd.f32 %v747_v13, %v691_v15 }
  0xea   : > { %v982_v12 = vpop.permute.xlu0 %981  ;;  %p2770_p12 = pnand %p2769_p11, %p2977_p5 }
  0xeb   : > { %v780_v46 = vpop.permute.xlu1 %779 }
  0xec   : > { %v818_v58 = vmul.f32 %v3179_v17, %v780_v46  ;;  %v819_v19 = vmul.f32 %v3181_v18, %v780_v46  ;;  %p2771_p13 = pneg %p2770_p12 }
  0xee   : > { %v834_v32 = vadd.f32 %v818_v58, %v762_v48  ;;  %v835_v33 = vadd.f32 %v819_v19, %v763_v26  ;;  %v972_v58 = vpop.permute.xlu0 %971 }
  0xef   : > { %v784_v4 = vpop.permute.xlu1 %783 }
  0xf0   : > { %v820_v14 = vmul.f32 %v3179_v17, %v784_v4  ;;  %v821_v50 = vmul.f32 %v3181_v18, %v784_v4 }
  0xf2   : > { %v836_v22 = vadd.f32 %v820_v14, %v764_v57  ;;  %v837_v23 = vadd.f32 %v821_v50, %v765_v16 }
  0xf4   : > { %v876_v27 = vpop.permute.xlu1 %875  ;;  %v900_v35 = vadd.f32 %v866_v31, %v836_v22  ;;  %v901_v36 = vadd.f32 %v866_v31, %v837_v23 }
  0xf5   : > { %v904_v29 = vadd.f32 %v876_v27, %v840_v24  ;;  %v905_v30 = vadd.f32 %v876_v27, %v841_v25 }
  0xf6   : > { %v917_v45 = vmax.f32 %v901_v36, 0.0  ;;  %v916_v46 = vmax.f32 %v900_v35, 0.0 }
  0xf7   : > { %v920_v28 = vmax.f32 %v904_v29, 0.0  ;;  %v921_v37 = vmax.f32 %v905_v30, 0.0 }
  0xf8   : > { %v861_v38 = vpop.permute.xlu1 %860 }
  0xf9   : > { %v898_v39 = vadd.f32 %v861_v38, %v834_v32  ;;  %v899_v40 = vadd.f32 %v861_v38, %v835_v33  ;;  %v941_v41 = vpack.c.bf16 %v921_v37, %v919_v11  ;;  %v940_v42 = vpack.c.bf16 %v920_v28, %v918_v34  ;;  %v962_v37 = vpop.permute.xlu0 %961 }
  0xfb   : > { %v914_v43 = vmax.f32 %v898_v39, 0.0  ;;  %v915_v44 = vmax.f32 %v899_v40, 0.0  ;;  %1039 = vmatprep.subr.bf16.mxu0 %v941_v41  ;;  %2660 = vmatprep.subr.bf16.mxu1 %v941_v41 }
  0xfc   : > { %1040 = vmatpush1.bf16.msra.mxu0 %v940_v42  ;;  %2664 = vmatpush1.bf16.msra.mxu1 %v940_v42  ;;  %v987_v63 = vpop.permute.xlu1 %986 }
  0xfd   : > { %v939_v47 = vpack.c.bf16 %v917_v45, %v915_v44  ;;  %v938_v49 = vpack.c.bf16 %v916_v46, %v914_v43 }
  0xff   : > { %1041 = vmatprep.subr.bf16.mxu0 %v939_v47  ;;  %2661 = vmatprep.subr.bf16.mxu1 %v939_v47 }
 0x100   : > { %1042 = vmatpush1.bf16.msra.mxu0 %v938_v49  ;;  %2665 = vmatpush1.bf16.msra.mxu1 %v938_v49  ;;  %v977_v50 = vpop.permute.xlu1 %976 }
 0x103   : > { %2599 = vmatmul.mubr.msk.bf16.vlgmr.msra.gmra.mxu0 %vm1014_vm0, %v2740_v51  ;;  %2601 = vmatmul.mubr.msk.bf16.vlgmr.msra.gmra.mxu1 %vm1014_vm0, %v2741_v54 }
 0x104   : > { %1069 = vmatprep.mubr.bf16.mxu0 %v3700_v5  ;;  %1089 = vmatprep.mubr.bf16.mxu1 %v3700_v5  ;;  %v967_v26 = vpop.permute.xlu1 %966 }
 0x108   : > { %v957_v44 = vpop.permute.xlu1 %956 }
 0x10b   : > { %2600 = vmatmul.mubr.msk.bf16.gmra.mxu0 %vm1014_vm0, %v2742_v53  ;;  %2602 = vmatmul.mubr.msk.bf16.gmra.mxu1 %vm1014_vm0, %v2743_v52 }
 0x10c   : > { %1244 = vmatprep.mubr.bf16.mxu1 %v3700_v5  ;;  %1429 = vmatprep.mubr.bf16.mxu0 %v3700_v5 }
 0x1c3   : > { %v1061_v59 = vpop.f32.mrf.mxu0  ;;  %v1081_v60 = vpop.f32.mrf.mxu1 }
 0x1c4   : > { %v1082_v11 = vadd.f32 %v1081_v60, %v977_v50 }
 0x1c5   : > { %v1063_v62 = vpop.f32.mrf.mxu0  ;;  %v1083_v56 = vpop.f32.mrf.mxu1 }
 0x1c6   : > { %v1084_v25 = vadd.f32 %v1083_v56, %v977_v50  ;;  %v1108_v45 = vmax.f32 %v1082_v11, 0.0  ;;  %v1064_v47 = vadd.f32 %v1063_v62, %v957_v44  ;;  %v2744_v62 = vld [vmem:[%s3723_s5] sm:$0xff]  }
 0x1c7   : > { %v1065_v3 = vpop.f32.mrf.mxu0  ;;  %v1085_v55 = vpop.f32.mrf.mxu1 }
 0x1c8   : > { %v1086_v27 = vadd.f32 %v1085_v55, %v982_v12  ;;  %v1109_v35 = vmax.f32 %v1084_v25, 0.0  ;;  %v1066_v51 = vadd.f32 %v1065_v3, %v962_v37  ;;  %v2746_v3 = vld [vmem:[%s3723_s5 + $0x10] sm:$0xff]  }
 0x1c9   : > { %v1067_v4 = vpop.f32.mrf.mxu0  ;;  %v1087_v10 = vpop.f32.mrf.mxu1 }
 0x1ca   : > { %v1088_v19 = vadd.f32 %v1087_v10, %v982_v12  ;;  %v1110_v38 = vmax.f32 %v1086_v27, 0.0  ;;  %v1068_v41 = vadd.f32 %v1067_v4, %v962_v37  ;;  %v1102_v55 = vmax.f32 %v1066_v51, 0.0 }
 0x1cb   : > { %v1071_v13 = vpop.f32.mrf.mxu0  ;;  %v1091_v14 = vpop.f32.mrf.mxu1 }
 0x1cc   : > { %v1092_v22 = vadd.f32 %v1091_v14, %v987_v63  ;;  %v1111_v30 = vmax.f32 %v1088_v19, 0.0  ;;  %v1072_v46 = vadd.f32 %v1071_v13, %v967_v26  ;;  %v1128_v54 = vpack.c.bf16 %v1110_v38, %v1108_v45  ;;  %v2747_v14 = vld [vmem:[%s3723_s5 + $0x18] sm:$0xff]  }
 0x1cd   : > { %v1073_v0 = vpop.f32.mrf.mxu0  ;;  %v1093_v15 = vpop.f32.mrf.mxu1  ;;  %v1103_v52 = vmax.f32 %v1068_v41, 0.0 }
 0x1ce   : > { %v1094_v20 = vadd.f32 %v1093_v15, %v987_v63  ;;  %v1112_v34 = vmax.f32 %v1092_v22, 0.0  ;;  %v1074_v36 = vadd.f32 %v1073_v0, %v967_v26  ;;  %v1129_v42 = vpack.c.bf16 %v1111_v30, %v1109_v35  ;;  %v1178_v22 = vpop.permute.xlu0 %1177 }
 0x1cf   : > { %v1075_v57 = vpop.f32.mrf.mxu0  ;;  %v1095_v16 = vpop.f32.mrf.mxu1  ;;  %v1104_v56 = vmax.f32 %v1072_v46, 0.0  ;;  %v1101_v63 = vmax.f32 %v1064_v47, 0.0 }
 0x1d0   : > { %v1096_v21 = vadd.f32 %v1095_v16, %v992_v61  ;;  %v1113_v31 = vmax.f32 %v1094_v20, 0.0  ;;  %v1076_v39 = vadd.f32 %v1075_v57, %v972_v58  ;;  %v1105_v49 = vmax.f32 %v1074_v36, 0.0 }
 0x1d1   : > { %v1077_v23 = vpop.f32.mrf.mxu0  ;;  %v1097_v24 = vpop.f32.mrf.mxu1  ;;  %v1125_v10 = vpack.c.bf16 %v1103_v52, %v1101_v63 }
 0x1d2   : > { %v1098_v48 = vadd.f32 %v1097_v24, %v992_v61  ;;  %v1114_v29 = vmax.f32 %v1096_v21, 0.0  ;;  %v1078_v32 = vadd.f32 %v1077_v23, %v972_v58  ;;  %v1106_v53 = vmax.f32 %v1076_v39, 0.0  ;;  %v1173_v24 = vpop.permute.xlu1 %1172  ;;  %v1168_v26 = vpop.permute.xlu0 %1167 }
 0x1d3   : > { %v1062_v61 = vadd.f32 %v1061_v59, %v957_v44  ;;  %v2745_v59 = vld [vmem:[%s3723_s5 + $0x8] sm:$0xff]   ;;  %s2774_s5 = scalar_lea.vmem %s2773_s0, 256 }
 0x1d4   : > { %v1115_v33 = vmax.f32 %v1098_v48, 0.0  ;;  %v1130_v40 = vpack.c.bf16 %v1114_v29, %v1112_v34  ;;  %v1107_v43 = vmax.f32 %v1078_v32, 0.0  ;;  %v1126_v4 = vpack.c.bf16 %v1106_v53, %v1104_v56  ;;  %p2776_p1 = scmp.lt.s32.totalorder %s2774_s5, %s2768_s3 }
 0x1d5   : > { %v1100_v12 = vmax.f32 %v1062_v61, 0.0 }
 0x1d6   : > { %v1131_v28 = vpack.c.bf16 %v1115_v33, %v1113_v31  ;;  %v1127_v60 = vpack.c.bf16 %v1107_v43, %v1105_v49  ;;  %v1163_v29 = vpop.permute.xlu1 %1162  ;;  %v1158_v34 = vpop.permute.xlu0 %1157  ;;  %p2777_p2 = por %p2776_p1, %p2775_p0 }
 0x1d7   : > { %v1124_v13 = vpack.c.bf16 %v1102_v55, %v1100_v12 }
 0x1d8   : > { %1220 = vmatprep.subr.bf16.mxu1 %v1131_v28  ;;  %p2778_p3 = pnand %p2777_p2, %p2771_p13 }
 0x1d9   : > { %1221 = vmatpush1.bf16.msra.mxu1 %v1130_v40 }
 0x1da   : > { %1222 = vmatprep.subr.bf16.mxu1 %v1129_v42  ;;  %v1153_v38 = vpop.permute.xlu1 %1152 }
 0x1dd   : > { %1223 = vmatpush1.bf16.msra.mxu1 %v1128_v54  ;;  %v1148_v54 = vpop.permute.xlu0 %1147 }
 0x1de   : > { %1224 = vmatprep.subr.bf16.mxu1 %v1127_v60  ;;  %v1143_v55 = vpop.permute.xlu1 %1142 }
 0x1e1   : > { %1225 = vmatpush1.bf16.msra.mxu1 %v1126_v4 }
 0x1e2   : > { %1226 = vmatprep.subr.bf16.mxu1 %v1125_v10 }
 0x1e5   : > { %1227 = vmatpush1.bf16.msra.mxu1 %v1124_v13 }
 0x1e8   : > { %2607 = vmatmul.mubr.msk.bf16.vlgmr.msra.gmra.mxu1 %vm1014_vm0, %v2744_v62 }
 0x1e9   : > { %1254 = vmatprep.mubr.bf16.mxu1 %v3700_v5 }
 0x1f0   : > { %2608 = vmatmul.mubr.msk.bf16.gmra.mxu1 %vm1014_vm0, %v2745_v59 }
 0x1f1   : > { %1264 = vmatprep.mubr.bf16.mxu1 %v3700_v5 }
 0x1f8   : > { %2609 = vmatmul.mubr.msk.bf16.gmra.mxu1 %vm1014_vm0, %v2746_v3 }
 0x1f9   : > { %1274 = vmatprep.mubr.bf16.mxu1 %v3700_v5 }
 0x200   : > { %2610 = vmatmul.mubr.msk.bf16.gmra.mxu1 %vm1014_vm0, %v2747_v14 }
 0x201   : > { %1614 = vmatprep.mubr.bf16.mxu1 %v3700_v5 }
 0x2a8   : > { %v1246_v50 = vpop.f32.mrf.mxu1 }
 0x2aa   : > { %v1248_v0 = vpop.f32.mrf.mxu1 }
 0x2ab   : > { %v1249_v12 = vadd.f32 %v1248_v0, %v1143_v55  ;;  %v2748_v0 = vld [vmem:[%s3674_s7] sm:$0xff]  }
 0x2ac   : > { %v1250_v15 = vpop.f32.mrf.mxu1 }
 0x2ad   : > { %v1251_v62 = vadd.f32 %v1250_v15, %v1148_v54  ;;  %v2750_v15 = vld [vmem:[%s3674_s7 + $0x10] sm:$0xff]  }
 0x2ae   : > { %v1252_v57 = vpop.f32.mrf.mxu1 }
 0x2af   : > { %v1253_v61 = vadd.f32 %v1252_v57, %v1148_v54  ;;  %v1287_v57 = vmax.f32 %v1251_v62, 0.0 }
 0x2b0   : > { %v1256_v16 = vpop.f32.mrf.mxu1 }
 0x2b1   : > { %v1257_v4 = vadd.f32 %v1256_v16, %v1153_v38  ;;  %v1288_v14 = vmax.f32 %v1253_v61, 0.0 }
 0x2b2   : > { %v1258_v58 = vpop.f32.mrf.mxu1 }
 0x2b3   : > { %v1259_v47 = vadd.f32 %v1258_v58, %v1153_v38 }
 0x2b4   : > { %v1260_v19 = vpop.f32.mrf.mxu1 }
 0x2b5   : > { %v1261_v53 = vadd.f32 %v1260_v19, %v1158_v34  ;;  %v1290_v13 = vmax.f32 %v1259_v47, 0.0  ;;  %v1289_v19 = vmax.f32 %v1257_v4, 0.0 }
 0x2b6   : > { %v1262_v20 = vpop.f32.mrf.mxu1 }
 0x2b7   : > { %v1263_v41 = vadd.f32 %v1262_v20, %v1158_v34  ;;  %v1291_v59 = vmax.f32 %v1261_v53, 0.0  ;;  %v1247_v20 = vadd.f32 %v1246_v50, %v1143_v55  ;;  %v2749_v50 = vld [vmem:[%s3674_s7 + $0x8] sm:$0xff]   ;;  %v1363_v34 = vpop.permute.xlu0 %1362 }
 0x2b8   : > { %v1266_v21 = vpop.f32.mrf.mxu1 }
 0x2b9   : > { %v1267_v45 = vadd.f32 %v1266_v21, %v1163_v29  ;;  %v1292_v56 = vmax.f32 %v1263_v41, 0.0  ;;  %v1286_v21 = vmax.f32 %v1249_v12, 0.0 }
 0x2ba   : > { %v1268_v23 = vpop.f32.mrf.mxu1 }
 0x2bb   : > { %v1269_v28 = vadd.f32 %v1268_v23, %v1163_v29  ;;  %v1293_v10 = vmax.f32 %v1267_v45, 0.0  ;;  %v1312_v58 = vpack.c.bf16 %v1292_v56, %v1290_v13  ;;  %v1310_v23 = vpack.c.bf16 %v1288_v14, %v1286_v21  ;;  %v1353_v38 = vpop.permute.xlu0 %1352 }
 0x2bc   : > { %v1270_v25 = vpop.f32.mrf.mxu1 }
 0x2bd   : > { %v1271_v39 = vadd.f32 %v1270_v25, %v1168_v26  ;;  %v1294_v49 = vmax.f32 %v1269_v28, 0.0  ;;  %v2751_v25 = vld [vmem:[%s3674_s7 + $0x18] sm:$0xff]  }
 0x2be   : > { %v1272_v48 = vpop.f32.mrf.mxu1 }
 0x2bf   : > { %v1273_v32 = vadd.f32 %v1272_v48, %v1168_v26  ;;  %v1295_v52 = vmax.f32 %v1271_v39, 0.0 }
 0x2c0   : > { %v1276_v27 = vpop.f32.mrf.mxu1 }
 0x2c1   : > { %v1277_v35 = vadd.f32 %v1276_v27, %v1173_v24  ;;  %v1296_v42 = vmax.f32 %v1273_v32, 0.0  ;;  %v1313_v3 = vpack.c.bf16 %v1295_v52, %v1293_v10 }
 0x2c2   : > { %v1278_v30 = vpop.f32.mrf.mxu1 }
 0x2c3   : > { %v1279_v33 = vadd.f32 %v1278_v30, %v1173_v24  ;;  %v1297_v46 = vmax.f32 %v1277_v35, 0.0  ;;  %v1314_v63 = vpack.c.bf16 %v1296_v42, %v1294_v49  ;;  %v1285_v24 = vmax.f32 %v1247_v20, 0.0 }
 0x2c4   : > { %v1280_v31 = vpop.f32.mrf.mxu1 }
 0x2c5   : > { %v1281_v11 = vadd.f32 %v1280_v31, %v1178_v22  ;;  %v1298_v43 = vmax.f32 %v1279_v33, 0.0  ;;  %v1309_v16 = vpack.c.bf16 %v1287_v57, %v1285_v24 }
 0x2c6   : > { %v1282_v36 = vpop.f32.mrf.mxu1 }
 0x2c7   : > { %v1283_v37 = vadd.f32 %v1282_v36, %v1178_v22  ;;  %v1299_v40 = vmax.f32 %v1281_v11, 0.0  ;;  %v1311_v22 = vpack.c.bf16 %v1291_v59, %v1289_v19  ;;  %v1358_v36 = vpop.permute.xlu1 %1357 }
 0x2c9   : > { %v1300_v44 = vmax.f32 %v1283_v37, 0.0  ;;  %v1315_v60 = vpack.c.bf16 %v1299_v40, %v1297_v46  ;;  %v1343_v46 = vpop.permute.xlu0 %1342 }
 0x2cb   : > { %v1316_v51 = vpack.c.bf16 %v1300_v44, %v1298_v43  ;;  %v1348_v40 = vpop.permute.xlu1 %1347 }
 0x2cd   : > { %1405 = vmatprep.subr.bf16.mxu0 %v1316_v51  ;;  %v1333_v59 = vpop.permute.xlu0 %1332 }
 0x2ce   : > { %1406 = vmatpush1.bf16.msra.mxu0 %v1315_v60 }
 0x2cf   : > { %1407 = vmatprep.subr.bf16.mxu0 %v1314_v63  ;;  %v1338_v53 = vpop.permute.xlu1 %1337 }
 0x2d2   : > { %1408 = vmatpush1.bf16.msra.mxu0 %v1313_v3 }
 0x2d3   : > { %1409 = vmatprep.subr.bf16.mxu0 %v1312_v58  ;;  %v1328_v57 = vpop.permute.xlu1 %1327 }
 0x2d6   : > { %1410 = vmatpush1.bf16.msra.mxu0 %v1311_v22 }
 0x2d7   : > { %1411 = vmatprep.subr.bf16.mxu0 %v1310_v23 }
 0x2da   : > { %1412 = vmatpush1.bf16.msra.mxu0 %v1309_v16 }
 0x2dd   : > { %2615 = vmatmul.mubr.msk.bf16.vlgmr.msra.gmra.mxu0 %vm1014_vm0, %v2748_v0 }
 0x2de   : > { %1439 = vmatprep.mubr.bf16.mxu0 %v3700_v5 }
 0x2e5   : > { %2616 = vmatmul.mubr.msk.bf16.gmra.mxu0 %vm1014_vm0, %v2749_v50 }
 0x2e6   : > { %1449 = vmatprep.mubr.bf16.mxu0 %v3700_v5 }
 0x2ed   : > { %2617 = vmatmul.mubr.msk.bf16.gmra.mxu0 %vm1014_vm0, %v2750_v15 }
 0x2ee   : > { %1459 = vmatprep.mubr.bf16.mxu0 %v3700_v5 }
 0x2f5   : > { %2618 = vmatmul.mubr.msk.bf16.gmra.mxu0 %vm1014_vm0, %v2751_v25 }
 0x2f6   : > { %1943 = vmatprep.mubr.bf16.mxu0 %v3700_v5 }
 0x39d   : > { %v1431_v48 = vpop.f32.mrf.mxu0 }
 0x39f   : > { %v1433_v26 = vpop.f32.mrf.mxu0 }
 0x3a0   : > { %v1434_v24 = vadd.f32 %v1433_v26, %v1328_v57  ;;  %v2752_v26 = vld [vmem:[%s3676_s9] sm:$0xff]  }
 0x3a1   : > { %v1435_v27 = vpop.f32.mrf.mxu0 }
 0x3a2   : > { %v1436_v0 = vadd.f32 %v1435_v27, %v1333_v59  ;;  %v2754_v27 = vld [vmem:[%s3676_s9 + $0x10] sm:$0xff]  }
 0x3a3   : > { %v1437_v29 = vpop.f32.mrf.mxu0 }
 0x3a4   : > { %v1438_v20 = vadd.f32 %v1437_v29, %v1333_v59  ;;  %v1472_v29 = vmax.f32 %v1436_v0, 0.0  ;;  %v2459_v59 = vld [vmem:[%s3686_s19] sm:$0xf]  ;;  %v2286_v0 = vld [vmem:[%s3684_s17 + $0x28] sm:$0xff] }
 0x3a5   : > { %v1441_v30 = vpop.f32.mrf.mxu0 }
 0x3a6   : > { %v1442_v22 = vadd.f32 %v1441_v30, %v1338_v53  ;;  %v1473_v25 = vmax.f32 %v1438_v20, 0.0 }
 0x3a7   : > { %v1443_v31 = vpop.f32.mrf.mxu0 }
 0x3a8   : > { %v1444_v12 = vadd.f32 %v1443_v31, %v1338_v53  ;;  %v2096_v53 = vld [vmem:[%s3682_s15] sm:$0xff] }
 0x3a9   : > { %v1445_v32 = vpop.f32.mrf.mxu0 }
 0x3aa   : > { %v1446_v3 = vadd.f32 %v1445_v32, %v1343_v46  ;;  %v1475_v16 = vmax.f32 %v1444_v12, 0.0  ;;  %v1474_v32 = vmax.f32 %v1442_v22, 0.0  ;;  %v2288_v22 = vld [vmem:[%s3684_s17 + $0x38] sm:$0xff] }
 0x3ab   : > { %v1447_v33 = vpop.f32.mrf.mxu0 }
 0x3ac   : > { %v1448_v61 = vadd.f32 %v1447_v33, %v1343_v46  ;;  %v1476_v50 = vmax.f32 %v1446_v3, 0.0  ;;  %v1432_v33 = vadd.f32 %v1431_v48, %v1328_v57  ;;  %v2753_v48 = vld [vmem:[%s3676_s9 + $0x8] sm:$0xff]   ;;  %v2004_v46 = vld [vmem:[%s3680_s13 + $0x20] sm:$0xff] }
 0x3ad   : > { %v1451_v11 = vpop.f32.mrf.mxu0 }
 0x3ae   : > { %v1452_v4 = vadd.f32 %v1451_v11, %v1348_v40  ;;  %v1477_v19 = vmax.f32 %v1448_v61, 0.0  ;;  %v1471_v11 = vmax.f32 %v1434_v24, 0.0  ;;  %v2285_v61 = vld [vmem:[%s3684_s17 + $0x20] sm:$0xff]  ;;  %v1548_v24 = vpop.permute.xlu0 %1547 }
 0x3af   : > { %v1453_v35 = vpop.f32.mrf.mxu0 }
 0x3b0   : > { %v1454_v51 = vadd.f32 %v1453_v35, %v1348_v40  ;;  %v1478_v23 = vmax.f32 %v1452_v4, 0.0  ;;  %v1497_v31 = vpack.c.bf16 %v1477_v19, %v1475_v16  ;;  %v1495_v35 = vpack.c.bf16 %v1473_v25, %v1471_v11  ;;  %v1674_v40 = vld [vmem:[%s3678_s11 + $0x18] sm:$0xff]  ;;  %v2097_v19 = vld [vmem:[%s3682_s15 + $0x8] sm:$0xff] }
 0x3b1   : > { %v1455_v28 = vpop.f32.mrf.mxu0 }
 0x3b2   : > { %v1456_v52 = vadd.f32 %v1455_v28, %v1353_v38  ;;  %v1479_v13 = vmax.f32 %v1454_v51, 0.0  ;;  %v2755_v28 = vld [vmem:[%s3676_s9 + $0x18] sm:$0xff]   ;;  %v2100_v51 = vld [vmem:[%s3682_s15 + $0x20] sm:$0xff] }
 0x3b3   : > { %v1457_v37 = vpop.f32.mrf.mxu0 }
 0x3b4   : > { %v1458_v43 = vadd.f32 %v1457_v37, %v1353_v38  ;;  %v1480_v14 = vmax.f32 %v1456_v52, 0.0  ;;  %v1678_v37 = vld [vmem:[%s3678_s11 + $0x38] sm:$0xff]  ;;  %v1676_v38 = vld [vmem:[%s3678_s11 + $0x28] sm:$0xff]  ;;  %v2002_v52 = vld [vmem:[%s3680_s13 + $0x10] sm:$0xff] }
 0x3b5   : > { %v1461_v39 = vpop.f32.mrf.mxu0  ;;  %1828 = vperm.xlu1 %2725, %v1678_v37   ;;  %1764 = vperm.xlu0 %2724, %v1678_v37  }
 0x3b6   : > { %v1462_v47 = vadd.f32 %v1461_v39, %v1358_v36  ;;  %v1481_v56 = vmax.f32 %v1458_v43, 0.0  ;;  %v1498_v15 = vpack.c.bf16 %v1480_v14, %v1478_v23  ;;  %v1675_v39 = vld [vmem:[%s3678_s11 + $0x20] sm:$0xff]  ;;  %v2006_v43 = vld [vmem:[%s3680_s13 + $0x30] sm:$0xff]  ;;  %v2099_v14 = vld [vmem:[%s3682_s15 + $0x18] sm:$0xff] }
 0x3b7   : > { %v1463_v41 = vpop.f32.mrf.mxu0 }
 0x3b8   : > { %v1464_v44 = vadd.f32 %v1463_v41, %v1358_v36  ;;  %v1482_v10 = vmax.f32 %v1462_v47, 0.0  ;;  %v1499_v21 = vpack.c.bf16 %v1481_v56, %v1479_v13  ;;  %v1470_v36 = vmax.f32 %v1432_v33, 0.0  ;;  %v1673_v41 = vld [vmem:[%s3678_s11 + $0x10] sm:$0xff]  ;;  %v2003_v47 = vld [vmem:[%s3680_s13 + $0x18] sm:$0xff]  ;;  %v2001_v56 = vld [vmem:[%s3680_s13 + $0x8] sm:$0xff]  ;;  %v1538_v33 = vpop.permute.xlu0 %1537 }
 0x3b9   : > { %v1465_v42 = vpop.f32.mrf.mxu0  ;;  %2726 = vset.pattern.permute.xlu1 %v3700_v5  ;;  %1756 = vperm.xlu0 %2724, %v1676_v38   ;;  %v2101_v13 = vld [vmem:[%s3682_s15 + $0x28] sm:$0xff] }
 0x3ba   : > { %v1466_v45 = vadd.f32 %v1465_v42, %v1363_v34  ;;  %v1483_v63 = vmax.f32 %v1464_v44, 0.0  ;;  %v1494_v30 = vpack.c.bf16 %v1472_v29, %v1470_v36  ;;  %1706 = vperm.xlu1 %2726, %v1676_v38   ;;  %v1671_v42 = vld [vmem:[%s3678_s11] sm:$0xff]  ;;  %v2007_v44 = vld [vmem:[%s3680_s13 + $0x38] sm:$0xff] }
 0x3bb   : > { %v1467_v49 = vpop.f32.mrf.mxu0 }
 0x3bc   : > { %v1468_v54 = vadd.f32 %v1467_v49, %v1363_v34  ;;  %v1484_v60 = vmax.f32 %v1466_v45, 0.0  ;;  %v1496_v34 = vpack.c.bf16 %v1476_v50, %v1474_v32  ;;  %v1672_v45 = vld [vmem:[%s3678_s11 + $0x8] sm:$0xff]  ;;  %v2102_v49 = vld [vmem:[%s3682_s15 + $0x30] sm:$0xff]  ;;  %v1543_v50 = vpop.permute.xlu1 %1542 }
 0x3bd   : > { %1748 = vperm.xlu0 %2724, %v1674_v40  }
 0x3be   : > { %v1485_v55 = vmax.f32 %v1468_v54, 0.0  ;;  %v1500_v58 = vpack.c.bf16 %v1484_v60, %v1482_v10  ;;  %2727 = vset.pattern.permute.xlu1 %v2831_v2  ;;  %v2005_v54 = vld [vmem:[%s3680_s13 + $0x28] sm:$0xff]  ;;  %v2287_v60 = vld [vmem:[%s3684_s17 + $0x30] sm:$0xff]  ;;  %v2281_v10 = vld [vmem:[%s3684_s17] sm:$0xff] }
 0x3bf   : > { %1752 = vperm.xlu1 %2727, %v1675_v39  }
 0x3c0   : > { %v1501_v62 = vpack.c.bf16 %v1485_v55, %v1483_v63  ;;  %v2283_v63 = vld [vmem:[%s3684_s17 + $0x10] sm:$0xff]  ;;  %v2103_v55 = vld [vmem:[%s3682_s15 + $0x38] sm:$0xff]  ;;  %v1533_v11 = vpop.permute.xlu1 %1532 }
 0x3c1   : > { %2732 = vset.pattern.permute.xlu0 %v2830_v1 }
 0x3c2   : > { %1590 = vmatprep.subr.bf16.mxu1 %v1501_v62  ;;  %1808 = vperm.xlu0 %2732, %v1673_v41  }
 0x3c3   : > { %1591 = vmatpush1.bf16.msra.mxu1 %v1500_v58  ;;  %2728 = vset.pattern.permute.xlu1 %v2830_v1 }
 0x3c4   : > { %1592 = vmatprep.subr.bf16.mxu1 %v1499_v21  ;;  %1816 = vperm.xlu1 %2728, %v1675_v39  }
 0x3c6   : > { %1800 = vperm.xlu0 %2732, %v1671_v42  }
 0x3c7   : > { %1593 = vmatpush1.bf16.msra.mxu1 %v1498_v15 }
 0x3c8   : > { %1594 = vmatprep.subr.bf16.mxu1 %v1497_v31  ;;  %1820 = vperm.xlu1 %2728, %v1676_v38   ;;  %v2284_v31 = vld [vmem:[%s3684_s17 + $0x18] sm:$0xff] }
 0x3ca   : > { %2737 = vset.pattern.permute.xlu0 %v3700_v5 }
 0x3cb   : > { %1595 = vmatpush1.bf16.msra.mxu1 %v1496_v34  ;;  %1716 = vperm.xlu0 %2737, %v1678_v37   ;;  %v2282_v34 = vld [vmem:[%s3684_s17 + $0x8] sm:$0xff] }
 0x3cc   : > { %1596 = vmatprep.subr.bf16.mxu1 %v1495_v35  ;;  %2729 = vset.pattern.permute.xlu1 %v3700_v5 }
 0x3cd   : > { %1696 = vperm.xlu1 %2729, %v1674_v40  }
 0x3cf   : > { %1597 = vmatpush1.bf16.msra.mxu1 %v1494_v30  ;;  %1701 = vperm.xlu0 %2737, %v1675_v39   ;;  %v1523_v39 = vpop.permute.xlu1 %1522 }
 0x3d1   : > { %2730 = vset.pattern.permute.xlu1 %v2831_v2 }
 0x3d2   : > { %2623 = vmatmul.mubr.msk.bf16.vlgmr.msra.gmra.mxu1 %vm1014_vm0, %v2752_v26  ;;  %1744 = vperm.xlu1 %2730, %v1673_v41  }
 0x3d3   : > { %1624 = vmatprep.mubr.bf16.mxu1 %v3700_v5  ;;  %1691 = vperm.xlu0 %2737, %v1673_v41  }
 0x3d6   : > { %2731 = vset.pattern.permute.xlu1 %v3700_v5 }
 0x3d7   : > { %2040 = vperm.xlu1 %2731, %v2006_v43   ;;  %1686 = vperm.xlu0 %2737, %v1672_v45  }
 0x3da   : > { %2624 = vmatmul.mubr.msk.bf16.gmra.mxu1 %vm1014_vm0, %v2753_v48  ;;  %v1528_v48 = vpop.permute.xlu0 %1527 }
 0x3db   : > { %1634 = vmatprep.mubr.bf16.mxu1 %v3700_v5  ;;  %2045 = vperm.xlu1 %2731, %v2007_v44  }
 0x3dc   : > { %2030 = vperm.xlu0 %2737, %v2004_v46  }
 0x3df   : > { %2733 = vset.pattern.permute.xlu1 %v2830_v1 }
 0x3e0   : > { %1812 = vperm.xlu1 %2733, %v1674_v40   ;;  %2025 = vperm.xlu0 %2737, %v2003_v47  }
 0x3e2   : > { %2625 = vmatmul.mubr.msk.bf16.gmra.mxu1 %vm1014_vm0, %v2754_v27 }
 0x3e3   : > { %1644 = vmatprep.mubr.bf16.mxu1 %v3700_v5 }
 0x3e4   : > { %2734 = vset.pattern.permute.xlu1 %v3700_v5  ;;  %2136 = vperm.xlu0 %2737, %v2102_v49  }
 0x3e5   : > { %1681 = vperm.xlu1 %2734, %v1671_v42  }
 0x3e8   : > { %2126 = vperm.xlu0 %2737, %v2100_v51  }
 0x3e9   : > { %2735 = vset.pattern.permute.xlu1 %v2831_v2  ;;  %v2098_v2 = vld [vmem:[%s3682_s15 + $0x10] sm:$0xff] }
 0x3ea   : > { %2626 = vmatmul.mubr.msk.bf16.gmra.mxu1 %vm1014_vm0, %v2755_v28  ;;  %1736 = vperm.xlu1 %2735, %v1671_v42  }
 0x3eb   : > { %2208 = vmatprep.mubr.bf16.mxu1 %v3700_v5 }
 0x3ec   : > { %2116 = vperm.xlu0 %2737, %v2098_v2   ;;  %v1518_v2 = vpop.permute.xlu0 %1517 }
 0x3ee   : > { %1740 = vperm.xlu1 %2735, %v1672_v45  }
 0x3f0   : > { %2106 = vperm.xlu0 %2737, %v2096_v53  }
 0x3f2   : > { %2736 = vset.pattern.permute.xlu1 %v3700_v5 }
 0x3f3   : > { %2035 = vperm.xlu1 %2736, %v2005_v54  }
 0x3f4   : > { %2321 = vperm.xlu0 %2737, %v2287_v60  }
 0x3f7   : > { %2738 = vset.pattern.permute.xlu1 %v2830_v1  ;;  %v2000_v1 = vld [vmem:[%s3680_s13] sm:$0xff] }
 0x3f8   : > { %1804 = vperm.xlu1 %2738, %v1672_v45   ;;  %2311 = vperm.xlu0 %2737, %v2285_v61  }
 0x3fc   : > { %2739 = vset.pattern.permute.xlu1 %v3700_v5  ;;  %2301 = vperm.xlu0 %2737, %v2283_v63   ;;  %v1513_v63 = vpop.permute.xlu1 %1512 }
 0x3fd   : > { %2020 = vperm.xlu1 %2739, %v2002_v52  }
 0x400   : > { %2291 = vperm.xlu0 %2737, %v2281_v10  }
 0x401   : > { %2010 = vperm.xlu1 %2739, %v2000_v1  }
 0x404   : > { %2462 = vperm.xlu0 %2737, %v2459_v59  }
 0x405   : > { %2015 = vperm.xlu1 %2739, %v2001_v56  }
 0x409   : > { %2141 = vperm.xlu1 %2739, %v2103_v55  }
 0x40d   : > { %2131 = vperm.xlu1 %2739, %v2101_v13  }
 0x411   : > { %2121 = vperm.xlu1 %2739, %v2099_v14  }
 0x415   : > { %2111 = vperm.xlu1 %2739, %v2097_v19  }
 0x419   : > { %2326 = vperm.xlu1 %2739, %v2288_v22  }
 0x41d   : > { %2316 = vperm.xlu1 %2739, %v2286_v0  }
 0x421   : > { %2306 = vperm.xlu1 %2739, %v2284_v31  }
 0x425   : > { %2296 = vperm.xlu1 %2739, %v2282_v34  }
 0x492   : > { %v3409_v4 = vpop.f32.mrf.mxu1 }
 0x493   : > { %v1617_v22 = vadd.f32 %v3409_v4, %v1513_v63  ;;  %v2757_v4 = vld [vmem:[%s3679_s12 + $0x8] sm:$0xff]  }
 0x494   : > { %v3414_v12 = vpop.f32.mrf.mxu1 }
 0x495   : > { %v1619_v13 = vadd.f32 %v3414_v12, %v1513_v63  ;;  %v1655_v0 = vmax.f32 %v1617_v22, 0.0 }
 0x496   : > { %v3419_v62 = vpop.f32.mrf.mxu1 }
 0x497   : > { %v1621_v14 = vadd.f32 %v3419_v62, %v1518_v2  ;;  %v2756_v62 = vld [vmem:[%s3679_s12] sm:$0xff]  }
 0x498   : > { %v1622_v3 = vpop.f32.mrf.mxu1 }
 0x499   : > { %v1623_v1 = vadd.f32 %v1622_v3, %v1518_v2 }
 0x49a   : > { %v1626_v58 = vpop.f32.mrf.mxu1 }
 0x49b   : > { %v1627_v55 = vadd.f32 %v1626_v58, %v1523_v39 }
 0x49c   : > { %v1628_v20 = vpop.f32.mrf.mxu1 }
 0x49d   : > { %v1629_v49 = vadd.f32 %v1628_v20, %v1523_v39  ;;  %v1659_v3 = vmax.f32 %v1627_v55, 0.0 }
 0x49e   : > { %v1630_v21 = vpop.f32.mrf.mxu1 }
 0x49f   : > { %v1631_v53 = vadd.f32 %v1630_v21, %v1528_v48  ;;  %v1660_v59 = vmax.f32 %v1629_v49, 0.0 }
 0x4a0   : > { %v1632_v57 = vpop.f32.mrf.mxu1 }
 0x4a1   : > { %v1633_v42 = vadd.f32 %v1632_v57, %v1528_v48  ;;  %v1661_v20 = vmax.f32 %v1631_v53, 0.0  ;;  %v1658_v57 = vmax.f32 %v1623_v1, 0.0 }
 0x4a2   : > { %v1636_v23 = vpop.f32.mrf.mxu1 }
 0x4a3   : > { %v1637_v46 = vadd.f32 %v1636_v23, %v1533_v11  ;;  %v1662_v61 = vmax.f32 %v1633_v42, 0.0  ;;  %v1656_v23 = vmax.f32 %v1619_v13, 0.0  ;;  %v1873_v58 = vpack.c.bf16 %v1661_v20, %v1659_v3 }
 0x4a4   : > { %v1638_v16 = vpop.f32.mrf.mxu1 }
 0x4a5   : > { %v1639_v37 = vadd.f32 %v1638_v16, %v1533_v11  ;;  %v1663_v10 = vmax.f32 %v1637_v46, 0.0  ;;  %v1874_v21 = vpack.c.bf16 %v1662_v61, %v1660_v59  ;;  %v1872_v16 = vpack.c.bf16 %v1658_v57, %v1656_v23 }
 0x4a6   : > { %v1640_v15 = vpop.f32.mrf.mxu1 }
 0x4a7   : > { %v1641_v40 = vadd.f32 %v1640_v15, %v1538_v33  ;;  %v1664_v51 = vmax.f32 %v1639_v37, 0.0  ;;  %v2759_v15 = vld [vmem:[%s3679_s12 + $0x18] sm:$0xff]  }
 0x4a8   : > { %v1642_v25 = vpop.f32.mrf.mxu1 }
 0x4a9   : > { %v1643_v36 = vadd.f32 %v1642_v25, %v1538_v33  ;;  %v1665_v52 = vmax.f32 %v1641_v40, 0.0  ;;  %v1712_v25 = vpop.permute.xlu1 %1711 }
 0x4aa   : > { %v1646_v32 = vpop.f32.mrf.mxu1  ;;  %v1731_v53 = vmul.f32 %v1712_v25, %v3166_v8 }
 0x4ab   : > { %v1647_v27 = vadd.f32 %v1646_v32, %v1543_v50  ;;  %v1666_v43 = vmax.f32 %v1643_v36, 0.0  ;;  %v1875_v19 = vpack.c.bf16 %v1665_v52, %v1663_v10  ;;  %v1732_v52 = vmul.f32 %v1712_v25, %v3168_v9 }
 0x4ac   : > { %v1648_v29 = vpop.f32.mrf.mxu1 }
 0x4ad   : > { %v1649_v30 = vadd.f32 %v1648_v29, %v1543_v50  ;;  %v1667_v47 = vmax.f32 %v1647_v27, 0.0  ;;  %v1876_v56 = vpack.c.bf16 %v1666_v43, %v1664_v51  ;;  %v2758_v50 = vld [vmem:[%s3679_s12 + $0x10] sm:$0xff]   ;;  %v1761_v31 = vpop.permute.xlu1 %1760 }
 0x4ae   : > { %v1650_v35 = vpop.f32.mrf.mxu1  ;;  %v1779_v49 = vmul.f32 %v1761_v31, %v3162_v6  ;;  %v1780_v51 = vmul.f32 %v1761_v31, %v3164_v7 }
 0x4af   : > { %v1651_v26 = vadd.f32 %v1650_v35, %v1548_v24  ;;  %v1668_v44 = vmax.f32 %v1649_v30, 0.0 }
 0x4b0   : > { %v1652_v28 = vpop.f32.mrf.mxu1  ;;  %v1795_v63 = vadd.f32 %v1779_v49, %v1731_v53  ;;  %v1796_v55 = vadd.f32 %v1780_v51, %v1732_v52 }
 0x4b1   : > { %v1653_v38 = vadd.f32 %v1652_v28, %v1548_v24  ;;  %v1669_v41 = vmax.f32 %v1651_v26, 0.0  ;;  %v1657_v24 = vmax.f32 %v1621_v14, 0.0  ;;  %v1825_v33 = vpop.permute.xlu1 %1824  ;;  %v1765_v26 = vpop.permute.xlu0 %1764 }
 0x4b2   : > { %v1844_v1 = vmul.f32 %v1825_v33, %v3181_v18  ;;  %v1781_v3 = vmul.f32 %v1765_v26, %v3162_v6  ;;  %v1782_v23 = vmul.f32 %v1765_v26, %v3164_v7 }
 0x4b3   : > { %v1670_v45 = vmax.f32 %v1653_v38, 0.0  ;;  %v1877_v60 = vpack.c.bf16 %v1669_v41, %v1667_v47  ;;  %v1871_v12 = vpack.c.bf16 %v1657_v24, %v1655_v0 }
 0x4b5   : > { %v1878_v54 = vpack.c.bf16 %v1670_v45, %v1668_v44  ;;  %v1829_v32 = vpop.permute.xlu1 %1828  ;;  %v1757_v27 = vpop.permute.xlu0 %1756 }
 0x4b6   : > { %v1777_v59 = vmul.f32 %v1757_v27, %v3162_v6  ;;  %v1778_v14 = vmul.f32 %v1757_v27, %v3164_v7  ;;  %v1846_v22 = vmul.f32 %v1829_v32, %v3181_v18 }
 0x4b7   : > { %1919 = vmatprep.subr.bf16.mxu0 %v1878_v54 }
 0x4b8   : > { %1920 = vmatpush1.bf16.msra.mxu0 %v1877_v60  ;;  %v1843_v60 = vmul.f32 %v1825_v33, %v3179_v17 }
 0x4b9   : > { %1921 = vmatprep.subr.bf16.mxu0 %v1876_v56  ;;  %v1707_v11 = vpop.permute.xlu1 %1706  ;;  %v1749_v37 = vpop.permute.xlu0 %1748 }
 0x4ba   : > { %v1729_v10 = vmul.f32 %v1707_v11, %v3166_v8  ;;  %v1730_v13 = vmul.f32 %v1707_v11, %v3168_v9  ;;  %v3504_v57 = vadd.f32 %v1843_v60, %v1795_v63  ;;  %v1773_v24 = vmul.f32 %v1749_v37, %v3162_v6 }
 0x4bb   : > { %v1774_v0 = vmul.f32 %v1749_v37, %v3164_v7 }
 0x4bc   : > { %1922 = vmatpush1.bf16.msra.mxu0 %v1875_v19  ;;  %v1845_v19 = vmul.f32 %v1829_v32, %v3179_v17  ;;  %v1794_v25 = vadd.f32 %v1778_v14, %v1730_v13 }
 0x4bd   : > { %1923 = vmatprep.subr.bf16.mxu0 %v1874_v21  ;;  %v1753_v29 = vpop.permute.xlu1 %1752  ;;  %v1809_v39 = vpop.permute.xlu0 %1808  ;;  %v3506_v21 = vadd.f32 %v1844_v1, %v1796_v55 }
 0x4be   : > { %v1775_v31 = vmul.f32 %v1753_v29, %v3162_v6  ;;  %v1776_v11 = vmul.f32 %v1753_v29, %v3164_v7  ;;  %v1836_v49 = vmul.f32 %v1809_v39, %v3181_v18 }
 0x4c0   : > { %1924 = vmatpush1.bf16.msra.mxu0 %v1873_v58 }
 0x4c1   : > { %1925 = vmatprep.subr.bf16.mxu0 %v1872_v16  ;;  %v1817_v34 = vpop.permute.xlu1 %1816  ;;  %v1801_v41 = vpop.permute.xlu0 %1800 }
 0x4c2   : > { %v1839_v26 = vmul.f32 %v1817_v34, %v3179_v17  ;;  %v1840_v27 = vmul.f32 %v1817_v34, %v3181_v18  ;;  %v3536_v63 = vmul.f32 %v1801_v41, %v3179_v17  ;;  %v1832_v34 = vmul.f32 %v1801_v41, %v3181_v18 }
 0x4c4   : > { %1926 = vmatpush1.bf16.msra.mxu0 %v1871_v12 }
 0x4c5   : > { %v1821_v35 = vpop.permute.xlu1 %1820  ;;  %v1717_v46 = vpop.permute.xlu0 %1716 }
 0x4c6   : > { %v1734_v33 = vmul.f32 %v1717_v46, %v3168_v9  ;;  %v1841_v51 = vmul.f32 %v1821_v35, %v3179_v17  ;;  %v1842_v53 = vmul.f32 %v1821_v35, %v3181_v18 }
 0x4c7   : > { %2631 = vmatmul.mubr.msk.bf16.vlgmr.msra.gmra.mxu0 %vm1014_vm0, %v2756_v62 }
 0x4c8   : > { %1953 = vmatprep.mubr.bf16.mxu0 %v3700_v5  ;;  %v1798_v55 = vadd.f32 %v1782_v23, %v1734_v33 }
 0x4c9   : > { %v1697_v36 = vpop.permute.xlu1 %1696  ;;  %v1702_v61 = vpop.permute.xlu0 %1701 }
 0x4ca   : > { %v1725_v12 = vmul.f32 %v1697_v36, %v3166_v8  ;;  %v1726_v62 = vmul.f32 %v1697_v36, %v3168_v9  ;;  %v1727_v37 = vmul.f32 %v1702_v61, %v3166_v8  ;;  %v3529_v36 = vmul.f32 %v1809_v39, %v3179_v17 }
 0x4cb   : > { %v1728_v29 = vmul.f32 %v1702_v61, %v3168_v9 }
 0x4cc   : > { %v1789_v52 = vadd.f32 %v1773_v24, %v1725_v12  ;;  %v1790_v60 = vadd.f32 %v1774_v0, %v1726_v62 }
 0x4cd   : > { %v3465_v30 = vpop.permute.xlu1 %1744  ;;  %v1792_v62 = vadd.f32 %v1776_v11, %v1728_v29 }
 0x4ce   : > { %v1772_v35 = vmul.f32 %v3465_v30, %v3164_v7 }
 0x4cf   : > { %2632 = vmatmul.mubr.msk.bf16.gmra.mxu0 %vm1014_vm0, %v2757_v4  ;;  %v1733_v4 = vmul.f32 %v1717_v46, %v3166_v8 }
 0x4d0   : > { %1963 = vmatprep.mubr.bf16.mxu0 %v3700_v5 }
 0x4d1   : > { %v3467_v48 = vpop.permute.xlu1 %2040  ;;  %v1797_v1 = vadd.f32 %v1781_v3, %v1733_v4 }
 0x4d5   : > { %v3469_v28 = vpop.permute.xlu1 %2045 }
 0x4d7   : > { %2633 = vmatmul.mubr.msk.bf16.gmra.mxu0 %vm1014_vm0, %v2758_v50  ;;  %v1692_v50 = vpop.permute.xlu0 %1691 }
 0x4d8   : > { %1973 = vmatprep.mubr.bf16.mxu0 %v3700_v5  ;;  %v1723_v14 = vmul.f32 %v1692_v50, %v3166_v8  ;;  %v1724_v3 = vmul.f32 %v1692_v50, %v3168_v9  ;;  %v1861_v50 = vadd.f32 %v1845_v19, %v1797_v1 }
 0x4d9   : > { %v3471_v38 = vpop.permute.xlu1 %1812 }
 0x4da   : > { %v1837_v11 = vmul.f32 %v3471_v38, %v3179_v17 }
 0x4db   : > { %v1687_v61 = vpop.permute.xlu0 %1686 }
 0x4dc   : > { %v1722_v24 = vmul.f32 %v1687_v61, %v3168_v9  ;;  %v1721_v33 = vmul.f32 %v1687_v61, %v3166_v8 }
 0x4dd   : > { %v3473_v40 = vpop.permute.xlu1 %1681 }
 0x4de   : > { %v1719_v41 = vmul.f32 %v3473_v40, %v3166_v8  ;;  %v1856_v8 = vadd.f32 %v1840_v27, %v1792_v62 }
 0x4df   : > { %2634 = vmatmul.mubr.msk.bf16.gmra.mxu0 %vm1014_vm0, %v2759_v15  ;;  %v1793_v15 = vadd.f32 %v1777_v59, %v1729_v10  ;;  %v1771_v10 = vmul.f32 %v3465_v30, %v3162_v6  ;;  %v1791_v59 = vadd.f32 %v1775_v31, %v1727_v37  ;;  %v1720_v30 = vmul.f32 %v3473_v40, %v3168_v9 }
 0x4e0   : > { %2393 = vmatprep.mubr.bf16.mxu0 %v3700_v5  ;;  %v1838_v31 = vmul.f32 %v3471_v38, %v3181_v18  ;;  %v1858_v9 = vadd.f32 %v1842_v53, %v1794_v25  ;;  %v1853_v53 = vadd.f32 %v1837_v11, %v1789_v52 }
 0x4e1   : > { %v3477_v43 = vpop.permute.xlu1 %1736  ;;  %v1857_v19 = vadd.f32 %v1841_v51, %v1793_v15 }
 0x4e2   : > { %v1767_v23 = vmul.f32 %v3477_v43, %v3162_v6  ;;  %v1768_v4 = vmul.f32 %v3477_v43, %v3164_v7 }
 0x4e4   : > { %v1783_v40 = vadd.f32 %v1767_v23, %v1719_v41 }
 0x4e5   : > { %v3487_v54 = vpop.permute.xlu1 %1740 }
 0x4e6   : > { %v1770_v0 = vmul.f32 %v3487_v54, %v3164_v7  ;;  %v1769_v37 = vmul.f32 %v3487_v54, %v3162_v6  ;;  %v2031_v54 = vpop.permute.xlu0 %2030 }
 0x4e8   : > { %v1786_v29 = vadd.f32 %v1770_v0, %v1722_v24 }
 0x4e9   : > { %v3512_v58 = vpop.permute.xlu1 %2035 }
 0x4ed   : > { %v1805_v39 = vpop.permute.xlu1 %1804 }
 0x4ee   : > { %v1834_v7 = vmul.f32 %v1805_v39, %v3181_v18  ;;  %v1833_v25 = vmul.f32 %v1805_v39, %v3179_v17 }
 0x4f1   : > { %v2021_v43 = vpop.permute.xlu1 %2020 }
 0x587   : > { %v3475_v42 = vpop.f32.mrf.mxu0 }
 0x588   : > { %3724 = vst [vmem:[#allocation11_spill] sm:$0xff] %v3475_v42  ;;  %v1862_v42 = vadd.f32 %v1846_v22, %v1798_v55  ;;  %v1785_v22 = vadd.f32 %v1769_v37, %v1721_v33  ;;  %v1854_v55 = vadd.f32 %v1838_v31, %v1790_v60 }
 0x589   : > { %v3479_v44 = vpop.f32.mrf.mxu0 }
 0x58a   : > { %3725 = vst [vmem:[#allocation12_spill] sm:$0xff] %v3479_v44  ;;  %v1788_v44 = vadd.f32 %v1772_v35, %v1724_v3  ;;  %v1850_v3 = vadd.f32 %v1834_v7, %v1786_v29 }
 0x58b   : > { %v3481_v45 = vpop.f32.mrf.mxu0 }
 0x58c   : > { %3726 = vst [vmem:[#allocation13_spill] sm:$0xff] %v3481_v45  ;;  %v1787_v45 = vadd.f32 %v1771_v10, %v1723_v14  ;;  %v1855_v10 = vadd.f32 %v1839_v26, %v1791_v59  ;;  %v1852_v15 = vadd.f32 %v1836_v49, %v1788_v44  ;;  %v1849_v44 = vadd.f32 %v1833_v25, %v1785_v22 }
 0x58d   : > { %v3483_v47 = vpop.f32.mrf.mxu0 }
 0x58e   : > { %v1851_v17 = vadd.f32 %v3529_v36, %v1787_v45  ;;  %v1987_v59 = vadd.f32 %v3483_v47, %v1850_v3 }
 0x58f   : > { %v3489_v2 = vpop.f32.mrf.mxu0 }
 0x590   : > { %3727 = vst [vmem:[#allocation14_spill] sm:$0xff] %v3489_v2  ;;  %v1784_v2 = vadd.f32 %v1768_v4, %v1720_v30 }
 0x591   : > { %v3495_v56 = vpop.f32.mrf.mxu0  ;;  %v3729_v30 = vld [vmem:[#allocation12_spill] sm:$0xff] }
 0x593   : > { %v3501_v20 = vpop.f32.mrf.mxu0 }
 0x594   : > { %v1990_v23 = vadd.f32 %v3501_v20, %v1853_v53  ;;  %v3730_v20 = vld [vmem:[#allocation13_spill] sm:$0xff] }
 0x595   : > { %v3514_v16 = vpop.f32.mrf.mxu0  ;;  %v1986_v33 = vadd.f32 %v3730_v20, %v1849_v44 }
 0x596   : > { %v1991_v51 = vadd.f32 %v3514_v16, %v1854_v55  ;;  %v1989_v16 = vadd.f32 %v3495_v56, %v1852_v15  ;;  %v2760_v15 = vld [vmem:[%s3681_s14] sm:$0xff]  }
 0x597   : > { %v3522_v32 = vpop.f32.mrf.mxu0  ;;  %v3728_v0 = vld [vmem:[#allocation14_spill] sm:$0xff] }
 0x598   : > { %v2053_v4 = vadd.f32 %v2021_v43, %v1989_v16 }
 0x599   : > { %v1967_v46 = vpop.f32.mrf.mxu0 }
 0x59a   : > { %v1993_v14 = vadd.f32 %v1967_v46, %v1856_v8  ;;  %v1992_v46 = vadd.f32 %v3522_v32, %v1855_v10 }
 0x59b   : > { %v1969_v13 = vpop.f32.mrf.mxu0 }
 0x59c   : > { %v1994_v27 = vadd.f32 %v1969_v13, %v1857_v19  ;;  %v2057_v49 = vadd.f32 %v2031_v54, %v1993_v14  ;;  %v2026_v13 = vpop.permute.xlu0 %2025  ;;  %v2056_v56 = vadd.f32 %v2031_v54, %v1992_v46 }
 0x59d   : > { %v1971_v12 = vpop.f32.mrf.mxu0 }
 0x59e   : > { %v1995_v61 = vadd.f32 %v1971_v12, %v1858_v9  ;;  %v1988_v12 = vadd.f32 %v3728_v0, %v1851_v17 }
 0x59f   : > { %v1975_v5 = vpop.f32.mrf.mxu0 }
 0x5a0   : > { %v1996_v35 = vadd.f32 %v1975_v5, %v3504_v57  ;;  %v2011_v5 = vpop.permute.xlu1 %2010  ;;  %v1848_v57 = vadd.f32 %v1832_v34, %v1784_v2  ;;  %v2055_v34 = vadd.f32 %v2026_v13, %v1991_v51  ;;  %v2052_v19 = vadd.f32 %v2021_v43, %v1988_v12 }
 0x5a1   : > { %v1977_v1 = vpop.f32.mrf.mxu0  ;;  %v3732_v51 = vmov 0  }
 0x5a2   : > { %v1997_v6 = vadd.f32 %v1977_v1, %v3506_v21  ;;  %v2059_v21 = vadd.f32 %v3512_v58, %v1995_v61  ;;  %v2060_v52 = vadd.f32 %v3467_v48, %v1996_v35  ;;  %v2071_v29 = vmax.f32 %v2055_v34, 0.0 }
 0x5a3   : > { %v1979_v38 = vpop.f32.mrf.mxu0  ;;  %v2072_v1 = vmax.f32 %v2056_v56, 0.0  ;;  %v2069_v61 = vmax.f32 %v2053_v4, 0.0 }
 0x5a4   : > { %v1998_v18 = vadd.f32 %v1979_v38, %v1861_v50  ;;  %v2061_v41 = vadd.f32 %v3467_v48, %v1997_v6  ;;  %v2075_v45 = vmax.f32 %v2059_v21, 0.0  ;;  %v1847_v48 = vadd.f32 %v3536_v63, %v1783_v40  ;;  %v2016_v31 = vpop.permute.xlu1 %2015  ;;  %v3731_v63 = vld [vmem:[#allocation11_spill] sm:$0xff]  ;;  %v2763_v21 = vld [vmem:[%s3681_s14 + $0x18] sm:$0xff]  }
 0x5a5   : > { %v1981_v24 = vpop.f32.mrf.mxu0  ;;  %v2076_v62 = vmax.f32 %v2060_v52, 0.0  ;;  %v2073_v50 = vmax.f32 %v2057_v49, 0.0  ;;  %v2051_v9 = vadd.f32 %v2016_v31, %v1987_v59  ;;  %v2050_v6 = vadd.f32 %v2016_v31, %v1986_v33 }
 0x5a6   : > { %v2062_v26 = vadd.f32 %v3469_v28, %v1998_v18  ;;  %v1999_v60 = vadd.f32 %v1981_v24, %v1862_v42  ;;  %v2058_v42 = vadd.f32 %v3512_v58, %v1994_v27  ;;  %v2077_v36 = vmax.f32 %v2061_v41, 0.0  ;;  %v2761_v27 = vld [vmem:[%s3681_s14 + $0x8] sm:$0xff]   ;;  %v2762_v24 = vld [vmem:[%s3681_s14 + $0x10] sm:$0xff]  }
 0x5a7   : > { %v2054_v58 = vadd.f32 %v2026_v13, %v1990_v23  ;;  %v2093_v7 = vpack.c.bf16 %v2075_v45, %v2073_v50  ;;  %v1984_v40 = vadd.f32 %v3731_v63, %v1847_v48  ;;  %v2067_v55 = vmax.f32 %v2051_v9, 0.0 }
 0x5a8   : > { %v2063_v39 = vadd.f32 %v3469_v28, %v1999_v60  ;;  %v2078_v2 = vmax.f32 %v2062_v26, 0.0  ;;  %v1985_v28 = vadd.f32 %v3729_v30, %v1848_v57  ;;  %v2074_v37 = vmax.f32 %v2058_v42, 0.0  ;;  %v2142_v16 = vpop.permute.xlu1 %2141 }
 0x5a9   : > { %v2070_v54 = vmax.f32 %v2054_v58, 0.0  ;;  %v2091_v10 = vpack.c.bf16 %v2071_v29, %v2069_v61  ;;  %v2048_v35 = vadd.f32 %v2011_v5, %v1984_v40  ;;  %v2068_v38 = vmax.f32 %v2052_v19, 0.0 }
 0x5aa   : > { %v2079_v32 = vmax.f32 %v2063_v39, 0.0  ;;  %v2094_v11 = vpack.c.bf16 %v2078_v2, %v2076_v62  ;;  %v2049_v8 = vadd.f32 %v2011_v5, %v1985_v28  ;;  %v2092_v22 = vpack.c.bf16 %v2074_v37, %v2072_v1  ;;  %v2137_v39 = vpop.permute.xlu0 %2136 }
 0x5ab   : > { %v2066_v53 = vmax.f32 %v2050_v6, 0.0  ;;  %v2090_v14 = vpack.c.bf16 %v2070_v54, %v2068_v38  ;;  %v2064_v3 = vmax.f32 %v2048_v35, 0.0 }
 0x5ac   : > { %v2095_v47 = vpack.c.bf16 %v2079_v32, %v2077_v36  ;;  %v2065_v25 = vmax.f32 %v2049_v8, 0.0  ;;  %v2132_v23 = vpop.permute.xlu1 %2131 }
 0x5ad   : > { %v2088_v43 = vpack.c.bf16 %v2066_v53, %v2064_v3 }
 0x5ae   : > { %2184 = vmatprep.subr.bf16.mxu1 %v2095_v47  ;;  %v2089_v18 = vpack.c.bf16 %v2067_v55, %v2065_v25  ;;  %v2127_v2 = vpop.permute.xlu0 %2126 }
 0x5af   : > { %2185 = vmatpush1.bf16.msra.mxu1 %v2094_v11 }
 0x5b0   : > { %2186 = vmatprep.subr.bf16.mxu1 %v2093_v7  ;;  %v2122_v0 = vpop.permute.xlu1 %2121 }
 0x5b2   : > { %v2117_v28 = vpop.permute.xlu0 %2116 }
 0x5b3   : > { %2187 = vmatpush1.bf16.msra.mxu1 %v2092_v22 }
 0x5b4   : > { %2188 = vmatprep.subr.bf16.mxu1 %v2091_v10  ;;  %v2112_v7 = vpop.permute.xlu1 %2111 }
 0x5b6   : > { %v2107_v6 = vpop.permute.xlu0 %2106 }
 0x5b7   : > { %2189 = vmatpush1.bf16.msra.mxu1 %v2090_v14 }
 0x5b8   : > { %2190 = vmatprep.subr.bf16.mxu1 %v2089_v18 }
 0x5bb   : > { %2191 = vmatpush1.bf16.msra.mxu1 %v2088_v43 }
 0x5be   : > { %2639 = vmatmul.mubr.msk.bf16.vlgmr.msra.gmra.mxu1 %vm1014_vm0, %v2760_v15 }
 0x5bf   : > { %2218 = vmatprep.mubr.bf16.mxu1 %v3732_v51 }
 0x5c6   : > { %2640 = vmatmul.mubr.msk.bf16.gmra.mxu1 %vm1014_vm0, %v2761_v27 }
 0x5c7   : > { %2228 = vmatprep.mubr.bf16.mxu1 %v3732_v51 }
 0x5ce   : > { %2641 = vmatmul.mubr.msk.bf16.gmra.mxu1 %vm1014_vm0, %v2762_v24 }
 0x5cf   : > { %2238 = vmatprep.mubr.bf16.mxu1 %v3732_v51 }
 0x5d6   : > { %2642 = vmatmul.mubr.msk.bf16.gmra.mxu1 %vm1014_vm0, %v2763_v21 }
 0x5d7   : > { %2500 = vmatprep.mubr.bf16.mxu1 %v3732_v51 }
 0x67e   : > { %v2210_v41 = vpop.f32.mrf.mxu1 }
 0x67f   : > { %v2211_v18 = vadd.f32 %v2210_v41, %v2107_v6  ;;  %v2765_v41 = vld [vmem:[%s3683_s16 + $0x8] sm:$0xff]  }
 0x680   : > { %v2212_v26 = vpop.f32.mrf.mxu1 }
 0x681   : > { %v2213_v55 = vadd.f32 %v2212_v26, %v2107_v6  ;;  %v2249_v21 = vmax.f32 %v2211_v18, 0.0  ;;  %v2764_v26 = vld [vmem:[%s3683_s16] sm:$0xff]  }
 0x682   : > { %v2214_v60 = vpop.f32.mrf.mxu1 }
 0x683   : > { %v2215_v35 = vadd.f32 %v2214_v60, %v2112_v7  ;;  %v2250_v43 = vmax.f32 %v2213_v55, 0.0  ;;  %v2766_v60 = vld [vmem:[%s3683_s16 + $0x10] sm:$0xff]  }
 0x684   : > { %v2216_v5 = vpop.f32.mrf.mxu1 }
 0x685   : > { %v2217_v1 = vadd.f32 %v2216_v5, %v2112_v7  ;;  %v2251_v15 = vmax.f32 %v2215_v35, 0.0 }
 0x686   : > { %v2220_v57 = vpop.f32.mrf.mxu1 }
 0x687   : > { %v2221_v54 = vadd.f32 %v2220_v57, %v2117_v28  ;;  %v2252_v53 = vmax.f32 %v2217_v1, 0.0  ;;  %v2273_v5 = vpack.c.bf16 %v2251_v15, %v2249_v21  ;;  %v2767_v57 = vld [vmem:[%s3683_s16 + $0x18] sm:$0xff]  }
 0x688   : > { %v2222_v17 = vpop.f32.mrf.mxu1 }
 0x689   : > { %v2223_v11 = vadd.f32 %v2222_v17, %v2117_v28  ;;  %v2253_v3 = vmax.f32 %v2221_v54, 0.0  ;;  %v2274_v24 = vpack.c.bf16 %v2252_v53, %v2250_v43 }
 0x68a   : > { %v2224_v46 = vpop.f32.mrf.mxu1 }
 0x68b   : > { %v2225_v63 = vadd.f32 %v2224_v46, %v2122_v0  ;;  %v2254_v10 = vmax.f32 %v2223_v11, 0.0 }
 0x68c   : > { %v2226_v52 = vpop.f32.mrf.mxu1 }
 0x68d   : > { %v2227_v47 = vadd.f32 %v2226_v52, %v2122_v0  ;;  %v2255_v38 = vmax.f32 %v2225_v63, 0.0 }
 0x68e   : > { %v2230_v44 = vpop.f32.mrf.mxu1 }
 0x68f   : > { %v2231_v58 = vadd.f32 %v2230_v44, %v2127_v2  ;;  %v2256_v8 = vmax.f32 %v2227_v47, 0.0  ;;  %v2275_v27 = vpack.c.bf16 %v2255_v38, %v2253_v3 }
 0x690   : > { %v2232_v49 = vpop.f32.mrf.mxu1 }
 0x691   : > { %v2233_v62 = vadd.f32 %v2232_v49, %v2127_v2  ;;  %v2257_v22 = vmax.f32 %v2231_v58, 0.0  ;;  %v2276_v14 = vpack.c.bf16 %v2256_v8, %v2254_v10  ;;  %v2322_v2 = vpop.permute.xlu0 %2321 }
 0x692   : > { %v2234_v13 = vpop.f32.mrf.mxu1 }
 0x693   : > { %v2235_v4 = vadd.f32 %v2234_v13, %v2132_v23  ;;  %v2258_v9 = vmax.f32 %v2233_v62, 0.0 }
 0x694   : > { %v2236_v59 = vpop.f32.mrf.mxu1 }
 0x695   : > { %v2237_v36 = vadd.f32 %v2236_v59, %v2132_v23  ;;  %v2259_v40 = vmax.f32 %v2235_v4, 0.0  ;;  %v2327_v23 = vpop.permute.xlu1 %2326 }
 0x696   : > { %v2240_v42 = vpop.f32.mrf.mxu1 }
 0x697   : > { %v2241_v12 = vadd.f32 %v2240_v42, %v2137_v39  ;;  %v2260_v31 = vmax.f32 %v2237_v36, 0.0  ;;  %v2277_v25 = vpack.c.bf16 %v2259_v40, %v2257_v22 }
 0x698   : > { %v2242_v34 = vpop.f32.mrf.mxu1 }
 0x699   : > { %v2243_v32 = vadd.f32 %v2242_v34, %v2137_v39  ;;  %v2261_v37 = vmax.f32 %v2241_v12, 0.0  ;;  %v2278_v61 = vpack.c.bf16 %v2260_v31, %v2258_v9 }
 0x69a   : > { %v2244_v45 = vpop.f32.mrf.mxu1 }
 0x69b   : > { %v2245_v48 = vadd.f32 %v2244_v45, %v2142_v16  ;;  %v2262_v20 = vmax.f32 %v2243_v32, 0.0  ;;  %v2317_v45 = vpop.permute.xlu1 %2316  ;;  %v2312_v32 = vpop.permute.xlu0 %2311 }
 0x69c   : > { %v2246_v56 = vpop.f32.mrf.mxu1 }
 0x69d   : > { %v2247_v30 = vadd.f32 %v2246_v56, %v2142_v16  ;;  %v2263_v50 = vmax.f32 %v2245_v48, 0.0 }
 0x69f   : > { %v2264_v33 = vmax.f32 %v2247_v30, 0.0  ;;  %v2279_v19 = vpack.c.bf16 %v2263_v50, %v2261_v37  ;;  %v2307_v30 = vpop.permute.xlu1 %2306  ;;  %v2302_v31 = vpop.permute.xlu0 %2301 }
 0x6a1   : > { %v2280_v29 = vpack.c.bf16 %v2264_v33, %v2262_v20 }
 0x6a3   : > { %2369 = vmatprep.subr.bf16.mxu0 %v2280_v29  ;;  %v2297_v1 = vpop.permute.xlu1 %2296  ;;  %v2292_v10 = vpop.permute.xlu0 %2291 }
 0x6a4   : > { %2370 = vmatpush1.bf16.msra.mxu0 %v2279_v19 }
 0x6a5   : > { %2371 = vmatprep.subr.bf16.mxu0 %v2278_v61 }
 0x6a8   : > { %2372 = vmatpush1.bf16.msra.mxu0 %v2277_v25 }
 0x6a9   : > { %2373 = vmatprep.subr.bf16.mxu0 %v2276_v14 }
 0x6ac   : > { %2374 = vmatpush1.bf16.msra.mxu0 %v2275_v27 }
 0x6ad   : > { %2375 = vmatprep.subr.bf16.mxu0 %v2274_v24 }
 0x6b0   : > { %2376 = vmatpush1.bf16.msra.mxu0 %v2273_v5 }
 0x6b3   : > { %2647 = vmatmul.mubr.msk.bf16.vlgmr.msra.gmra.mxu0 %vm1014_vm0, %v2764_v26 }
 0x6b4   : > { %2403 = vmatprep.mubr.bf16.mxu0 %v3732_v51 }
 0x6bb   : > { %2648 = vmatmul.mubr.msk.bf16.gmra.mxu0 %vm1014_vm0, %v2765_v41 }
 0x6bc   : > { %2413 = vmatprep.mubr.bf16.mxu0 %v3732_v51 }
 0x6c3   : > { %2649 = vmatmul.mubr.msk.bf16.gmra.mxu0 %vm1014_vm0, %v2766_v60 }
 0x6c4   : > { %2423 = vmatprep.mubr.bf16.mxu0 %v3732_v51 }
 0x6cb   : > { %2650 = vmatmul.mubr.msk.bf16.gmra.mxu0 %vm1014_vm0, %v2767_v57 }
 0x773   : > { %v2395_v17 = vpop.f32.mrf.mxu0 }
 0x774   : > { %v2396_v27 = vadd.f32 %v2395_v17, %v2292_v10 }
 0x775   : > { %v2397_v46 = vpop.f32.mrf.mxu0 }
 0x776   : > { %v2398_v25 = vadd.f32 %v2397_v46, %v2292_v10  ;;  %v2434_v60 = vmax.f32 %v2396_v27, 0.0  ;;  %v2450_v46 = vld [vmem:[%s3685_s18] sm:$0x3] }
 0x777   : > { %v2399_v52 = vpop.f32.mrf.mxu0 }
 0x778   : > { %v2400_v14 = vadd.f32 %v2399_v52, %v2297_v1  ;;  %v2435_v21 = vmax.f32 %v2398_v25, 0.0  ;;  %v2463_v52 = vpop.permute.xlu0 %2462 }
 0x779   : > { %v2401_v44 = vpop.f32.mrf.mxu0 }
 0x77a   : > { %v2402_v54 = vadd.f32 %v2401_v44, %v2297_v1  ;;  %v2436_v5 = vmax.f32 %v2400_v14, 0.0 }
 0x77b   : > { %v2405_v16 = vpop.f32.mrf.mxu0 }
 0x77c   : > { %v2406_v35 = vadd.f32 %v2405_v16, %v2302_v31  ;;  %v2437_v43 = vmax.f32 %v2402_v54, 0.0  ;;  %v2451_v57 = vpack.c.bf16 %v2436_v5, %v2434_v60 }
 0x77d   : > { %v2407_v49 = vpop.f32.mrf.mxu0 }
 0x77e   : > { %v2408_v63 = vadd.f32 %v2407_v49, %v2302_v31  ;;  %v2438_v24 = vmax.f32 %v2406_v35, 0.0  ;;  %v2452_v41 = vpack.c.bf16 %v2437_v43, %v2435_v21 }
 0x77f   : > { %v2409_v39 = vpop.f32.mrf.mxu0 }
 0x780   : > { %v2410_v8 = vadd.f32 %v2409_v39, %v2307_v30  ;;  %v2439_v53 = vmax.f32 %v2408_v63, 0.0 }
 0x781   : > { %v2411_v13 = vpop.f32.mrf.mxu0 }
 0x782   : > { %v2412_v58 = vadd.f32 %v2411_v13, %v2307_v30  ;;  %v2440_v18 = vmax.f32 %v2410_v8, 0.0 }
 0x783   : > { %v2415_v59 = vpop.f32.mrf.mxu0 }
 0x784   : > { %v2416_v29 = vadd.f32 %v2415_v59, %v2312_v32  ;;  %v2441_v22 = vmax.f32 %v2412_v58, 0.0  ;;  %v2453_v26 = vpack.c.bf16 %v2440_v18, %v2438_v24 }
 0x785   : > { %v2417_v42 = vpop.f32.mrf.mxu0 }
 0x786   : > { %v2418_v50 = vadd.f32 %v2417_v42, %v2312_v32  ;;  %v2442_v38 = vmax.f32 %v2416_v29, 0.0  ;;  %v2454_v15 = vpack.c.bf16 %v2441_v22, %v2439_v53 }
 0x787   : > { %v2419_v34 = vpop.f32.mrf.mxu0 }
 0x788   : > { %v2420_v20 = vadd.f32 %v2419_v34, %v2317_v45  ;;  %v2443_v40 = vmax.f32 %v2418_v50, 0.0 }
 0x789   : > { %v2421_v51 = vpop.f32.mrf.mxu0 }
 0x78a   : > { %v2422_v12 = vadd.f32 %v2421_v51, %v2317_v45  ;;  %v2444_v61 = vmax.f32 %v2420_v20, 0.0 }
 0x78b   : > { %v2425_v36 = vpop.f32.mrf.mxu0 }
 0x78c   : > { %v2426_v28 = vadd.f32 %v2425_v36, %v2322_v2  ;;  %v2445_v37 = vmax.f32 %v2422_v12, 0.0  ;;  %v2455_v3 = vpack.c.bf16 %v2444_v61, %v2442_v38 }
 0x78d   : > { %v2427_v48 = vpop.f32.mrf.mxu0 }
 0x78e   : > { %v2428_v56 = vadd.f32 %v2427_v48, %v2322_v2  ;;  %v2446_v7 = vmax.f32 %v2426_v28, 0.0  ;;  %v2456_v55 = vpack.c.bf16 %v2445_v37, %v2443_v40 }
 0x78f   : > { %v2429_v0 = vpop.f32.mrf.mxu0 }
 0x790   : > { %v2430_v62 = vadd.f32 %v2429_v0, %v2327_v23  ;;  %v2447_v11 = vmax.f32 %v2428_v56, 0.0 }
 0x791   : > { %v2431_v4 = vpop.f32.mrf.mxu0 }
 0x792   : > { %v2432_v47 = vadd.f32 %v2431_v4, %v2327_v23  ;;  %v2448_v33 = vmax.f32 %v2430_v62, 0.0 }
 0x794   : > { %v2449_v9 = vmax.f32 %v2432_v47, 0.0  ;;  %v2457_v6 = vpack.c.bf16 %v2448_v33, %v2446_v7 }
 0x796   : > { %v2458_v19 = vpack.c.bf16 %v2449_v9, %v2447_v11 }
 0x798   : > { %2476 = vmatprep.subr.bf16.mxu1 %v2458_v19 }
 0x799   : > { %2477 = vmatpush1.bf16.msra.mxu1 %v2457_v6 }
 0x79a   : > { %2478 = vmatprep.subr.bf16.mxu1 %v2456_v55 }
 0x79d   : > { %2479 = vmatpush1.bf16.msra.mxu1 %v2455_v3 }
 0x79e   : > { %2480 = vmatprep.subr.bf16.mxu1 %v2454_v15 }
 0x7a1   : > { %2481 = vmatpush1.bf16.msra.mxu1 %v2453_v26 }
 0x7a2   : > { %2482 = vmatprep.subr.bf16.mxu1 %v2452_v41 }
 0x7a5   : > { %2483 = vmatpush1.bf16.msra.mxu1 %v2451_v57 }
 0x7a8   : > { %2651 = vmatmul.mubr.msk.bf16.vlgmr.msra.gmra.mxu1 %vm1014_vm0, %v2450_v46 }
 0x868   : > { %v2502_v17 = vpop.f32.mrf.mxu1 }
 0x869   : > { %v2503_v16 = vadd.f32 %v2502_v17, %v2463_v52 }
 0x86a   : > { %v2504_v44 = vpop.f32.mrf.mxu1 }
 0x86b   : > { %v2505_v49 = vadd.f32 %v2504_v44, %v2463_v52 }
 0x86c   : > { %v2506_v39 = vpop.f32.mrf.mxu1 }
 0x86d   : > { %v2511_v13 = vcombine.low %v2503_v16, %v2505_v49 }
 0x86e   : > { %v2507_v59 = vpop.f32.mrf.mxu1 }
 0x86f   : > { %2513 = vst [vmem:[%s623_s25] sm:$0xff] %v2511_v13 }
 0x870   : > { %2781 = shalt.err (!%p2778_p3)
}
 0x871   : > { %s2782_s24 = scalar_lea.hbm %s3632_s1, 128  ;;  %s2786_s26 = scalar_lea.hbm %s3687_s20, 512 }
 0x872   : > { %p2783_p4 = scmp.ne.s32.totalorder %s3632_s1, %s2782_s24  ;;  %p2787_p9 = scmp.lt.s32.totalorder %s3632_s1, %s3687_s20 }
 0x873   : > { %p2788_p10 = scmp.lt.s32.totalorder %s2786_s26, %s2782_s24 }
 0x874   : > { %p2784_p7 = pnand %p2783_p4, %p2977_p5 }
 0x875   : > { %p2789_p11 = por %p2788_p10, %p2787_p9 }
 0x876   : > { %p2785_p8 = pneg %p2784_p7 }
 0x878   : > { %p2790_p12 = pnand %p2789_p11, %p2785_p8 }
 0x87a   : > { %2793 = shalt.err (!%p2790_p12)
}
 0x87b   : > { %2666 = dma.vmem_to_hbm [thread:$0]  (%p2977_p5), %s2530_s21, 128, %s3632_s1, %s2515_s27  }
 0x87c PF: > { %s3733_s5 = sld [smem:[#allocation7_spill]] }
 0x87d   : > { %s3734_s3 = sld [smem:[#allocation5_spill]] }
 0x882   : > { %p2672_p13 = scmp.ge.s32.totalorder %s3733_s5, 2 }
 0x883   : > { %s2541_s6 = sand.u32 1, %s3734_s3  }
 0x884   : > { %p2669_p0 = pnand %p2672_p13, %p2981_p6  ;;  %s2542_s29 = scalar_lea.sflag [#allocation3], %s2541_s6 }
 0x886   : > { %p2670_p1 = pneg %p2669_p0 }
 0x888   : > { %2811 = dma.done.wait (%p2670_p1), %s2542_s29, 128  }
 0x889   : > { %2813 = vsyncadd (%p2670_p1), %s2542_s29, 4294967168  ;;  %s3736_s24 = sld [smem:[#allocation8_spill]]  ;;  %s3739_s1 = smov %s2820_s22 }
 0x88a   : > { %s3737_s25 = sld [smem:[#allocation6_spill]] }
 0x88b   : > { %s3738_s23 = sld [smem:[#allocation9_spill]] }
 0x88f   : > { %p30_p2 = scmp.ge.s32.totalorder %s3736_s24, 6  }
 0x890   : > { %s3740_s22 = smov %s3737_s25 }
 0x891   :  { %32 = sbr.rel (!%p30_p2) target bundleno = 11 (0xb), region = 135 }
 0x896   :  { %2547 = vsyncpa [#allocation3], 1 }
 0x897   :  { %2549 = vsyncpa [#allocation3 + $0x1], 1 }

</bundles_post_ra>
